<compile_context>
chip_gen: v6e
topology: v6e:2x2x1
jax: 0.10.0
libtpu: 0.0.40
codegen_flags: <defaults>
</compile_context>

<pallas_src>
import functools
import math

import jax
import jax.numpy as jnp
from jax.experimental import pallas as pl
from jax.experimental.pallas import tpu as pltpu

BN_EPS = 1e-5


def _residual_block_kernel(eps, inv_n, H, has_proj, *refs):
    """Fused conv3x3+BN+ReLU -> conv3x3+BN -> (+shortcut) -> ReLU.

    Activations are lane-dense (B*H, W*Cpad) f32.  `w?b_ref` hold the
    kh-stacked banded block weights (bf16, K = 3*W*Cpad), `mstat_ref` the 0/1
    channel-collapse matrix used for the BN statistics.
    """
    if has_proj:
        (xs_ref, w1b_ref, w2b_ref, wsb_ref,
         g1_ref, b1_ref, g2_ref, b2_ref, mstat_ref, out_ref) = refs
    else:
        (xs_ref, w1b_ref, w2b_ref,
         g1_ref, b1_ref, g2_ref, b2_ref, mstat_ref, out_ref) = refs
        wsb_ref = None

    def shifted3(x):
        # [x(h-1), x(h), x(h+1)] concatenated along lanes, zero at H borders.
        # pltpu.roll is an XLU sublane rotate (off the VALU/MXU critical path);
        # the wrap-around rows are exactly the boundary rows we mask to zero,
        # which also handles image boundaries inside the packed B*H axis.
        bh = x.shape[0]
        h_idx = jax.lax.broadcasted_iota(jnp.int32, x.shape, 0) % H
        up = jnp.where(h_idx > 0, pltpu.roll(x, shift=1, axis=0), 0.0)
        dn = jnp.where(h_idx < H - 1, pltpu.roll(x, shift=bh - 1, axis=0), 0.0)
        return jnp.concatenate([up, x, dn], axis=1).astype(jnp.bfloat16)

    def conv3x3(x, w_ref):
        # Single fused MXU matmul per conv: (BH, 3*W*Cpad) x (3*W*Cpad, W*Cpad).
        return jnp.dot(shifted3(x), w_ref[...], preferred_element_type=jnp.float32)

    def batchnorm(acc, g_ref, b_ref):
        # Training-mode BN (biased variance).  Per-channel stats come from ONE
        # channel-collapse matmul (sum and sum-of-squares stacked), f32 inputs
        # at HIGHEST precision; results return already broadcast over the
        # packed W*C lane dim.
        s = jnp.sum(acc, axis=0, keepdims=True)          # (1, W*Cpad)
        q = jnp.sum(acc * acc, axis=0, keepdims=True)    # (1, W*Cpad)
        sq = jnp.concatenate([s, q], axis=0) * inv_n     # (2, W*Cpad)
        stats = jnp.dot(sq, mstat_ref[...],
                        preferred_element_type=jnp.float32,
                        precision=jax.lax.Precision.HIGHEST)
        mean, mean_sq = stats[0:1, :], stats[1:2, :]
        inv = jax.lax.rsqrt(mean_sq - mean * mean + eps)
        return (acc - mean) * (inv * g_ref[...]) + b_ref[...]

    xs = xs_ref[...]                                     # (B*H, W*Cin_pad) f32

    h1 = jnp.maximum(batchnorm(conv3x3(xs, w1b_ref), g1_ref, b1_ref), 0.0)
    h2 = batchnorm(conv3x3(h1, w2b_ref), g2_ref, b2_ref)

    if has_proj:
        identity = jnp.dot(xs.astype(jnp.bfloat16), wsb_ref[...],
                           preferred_element_type=jnp.float32)
    else:
        identity = xs                                    # Cin == Cout -> Identity

    out_ref[...] = jnp.maximum(h2 + identity, 0.0)       # lane-dense store


def _pad_channels(c, w):
    """Smallest Cpad >= c with (w * Cpad) % 128 == 0 (lane-dense packing)."""
    q = 128 // math.gcd(w, 128)
    return ((c + q - 1) // q) * q


def prepare_params(params, W):
    """One-time, parameter-only transforms.  Call once; reuse every forward."""
    w1, g1, b1 = params["w1"], params["g1"], params["b1"]
    w2, g2, b2 = params["w2"], params["g2"], params["b2"]
    ws = params.get("ws")

    c_in, c_out = w1.shape[2], w1.shape[3]
    c_in_p, c_out_p = _pad_channels(c_in, W), _pad_channels(c_out, W)

    wi = jnp.arange(W)
    # sel[kw, w, v] = 1 iff input column w feeds output column v via tap kw.
    sel = jnp.stack([(wi[:, None] == (wi[None, :] + (kw - 1))).astype(jnp.float32)
                     for kw in range(3)], axis=0)            # (3, W, W)

    def band(wt, ci, co, cip, cop):
        # (3, 3, ci, co) HWIO -> kh-stacked banded weight (3*W*cip, W*cop),
        # with the kw taps and the W zero-padding folded in, channels padded.
        wt_p = jnp.zeros((3, 3, cip, cop), jnp.float32)
        wt_p = wt_p.at[:, :, :ci, :co].set(wt.astype(jnp.float32))
        wb = jnp.einsum("kwv,hkio->hwivo", sel, wt_p)        # (3, W, cip, W, cop)
        return wb.reshape(3 * W * cip, W * cop).astype(jnp.bfloat16)

    def tile_affine(v, co, cop):
        vp = jnp.zeros((cop,), jnp.float32).at[:co].set(v.astype(jnp.float32))
        return jnp.tile(vp, W).reshape(1, W * cop)

    lane = jnp.arange(W * c_out_p)
    mstat = ((lane[:, None] % c_out_p) == (lane[None, :] % c_out_p)).astype(jnp.float32)

    prep = {
        "W": W, "c_in": c_in, "c_out": c_out,
        "c_in_pad": c_in_p, "c_out_pad": c_out_p,
        "has_proj": ws is not None,
        "w1b": band(w1, c_in, c_out, c_in_p, c_out_p),
        "w2b": band(w2, c_out, c_out, c_out_p, c_out_p),
        "g1t": tile_affine(g1, c_out, c_out_p),
        "b1t": tile_affine(b1, c_out, c_out_p),
        "g2t": tile_affine(g2, c_out, c_out_p),
        "b2t": tile_affine(b2, c_out, c_out_p),
        "mstat": mstat,
    }
    if ws is not None:
        ws_p = jnp.zeros((c_in_p, c_out_p), jnp.float32).at[:c_in, :c_out].set(
            ws.astype(jnp.float32))
        eye_w = jnp.eye(W, dtype=jnp.float32)
        prep["wsb"] = jnp.einsum("wv,io->wivo", eye_w, ws_p).reshape(
            W * c_in_p, W * c_out_p).astype(jnp.bfloat16)
    return prep


def residual_block_packed(xs, prep, *, B, H):
    """Lane-dense forward.  xs is (B*H, W*c_in_pad) f32 (W and padded C packed
    into lanes).  Returns (B*H, W*c_out_pad) f32 in the same layout, so stacked
    blocks chain without NCHW<->packed HBM round trips."""
    W = prep["W"]
    c_in_p, c_out_p = prep["c_in_pad"], prep["c_out_pad"]
    BH, WCinP, WCoutP = B * H, W * c_in_p, W * c_out_p
    assert xs.shape == (BH, WCinP), (xs.shape, (BH, WCinP))
    has_proj = prep["has_proj"]
    inv_n = 1.0 / float(B * H * W)

    args = [xs, prep["w1b"], prep["w2b"]]
    if has_proj:
        args.append(prep["wsb"])
    args += [prep["g1t"], prep["b1t"], prep["g2t"], prep["b2t"], prep["mstat"]]

    # VMEM budget from the true live set: kernel args + output + in-kernel
    # temporaries (shifted/concat operands, conv accumulators, h1/h2, squares,
    # identity), capped against the chip's actual VMEM capacity.
    arg_bytes = sum(int(a.size) * a.dtype.itemsize for a in args)
    tmp_bytes = BH * (3 * WCinP + 3 * WCoutP) * 6 + 8 * BH * WCoutP * 4
    resident = arg_bytes + BH * WCoutP * 4 + tmp_bytes
    try:
        cap = int(pltpu.get_tpu_info().vmem_capacity_bytes)
    except Exception:
        cap = 64 << 20
    vmem_limit = int(min(max(2 * resident, 16 << 20), (cap * 9) // 10))

    kernel = functools.partial(_residual_block_kernel, BN_EPS, inv_n, H, has_proj)
    return pl.pallas_call(
        kernel,
        out_shape=jax.ShapeDtypeStruct((BH, WCoutP), jnp.float32),
        in_specs=[pl.BlockSpec(memory_space=pltpu.MemorySpace.VMEM) for _ in args],
        out_specs=pl.BlockSpec(memory_space=pltpu.MemorySpace.VMEM),
        compiler_params=pltpu.CompilerParams(vmem_limit_bytes=vmem_limit),
    )(*args)


def pack_nchw(x_nchw, c_pad):
    """NCHW -> lane-dense (B*H, W*c_pad) f32 (channels zero-padded to c_pad)."""
    B, C, H, W = x_nchw.shape
    x = jnp.transpose(x_nchw, (0, 2, 3, 1)).astype(jnp.float32)
    if c_pad > C:
        x = jnp.pad(x, ((0, 0), (0, 0), (0, 0), (0, c_pad - C)))
    return x.reshape(B * H, W * c_pad)


def unpack_nchw(x2d, B, H, W, C, c_pad):
    x = x2d.reshape(B, H, W, c_pad)[..., :C]
    return jnp.transpose(x, (0, 3, 1, 2))


def residual_block_nchw(x_nchw, prep):
    """NCHW-in / NCHW-out wrapper matching the PyTorch module interface.
    For stacks of blocks prefer residual_block_packed and convert only at the
    ends (the relayout is one extra HBM pass per conversion)."""
    B, C, H, W = x_nchw.shape
    xs = pack_nchw(x_nchw, prep["c_in_pad"])
    out2d = residual_block_packed(xs, prep, B=B, H=H)
    return unpack_nchw(out2d, B, H, W, prep["c_out"], prep["c_out_pad"])


def init_params(key, in_channels, out_channels):
    """Deterministic synthetic parameters (shapes follow the module __init__)."""
    k1, k2, k3, kg1, kb1, kg2, kb2 = jax.random.split(key, 7)
    s1 = 1.0 / jnp.sqrt(jnp.float32(in_channels * 9))
    s2 = 1.0 / jnp.sqrt(jnp.float32(out_channels * 9))
    params = {
        # conv weights stored as (kh, kw, Cin, Cout)  (torch: (Cout, Cin, kh, kw))
        "w1": jax.random.normal(k1, (3, 3, in_channels, out_channels), jnp.float32) * s1,
        "g1": 1.0 + 0.1 * jax.random.normal(kg1, (out_channels,), jnp.float32),
        "b1": 0.1 * jax.random.normal(kb1, (out_channels,), jnp.float32),
        "w2": jax.random.normal(k2, (3, 3, out_channels, out_channels), jnp.float32) * s2,
        "g2": 1.0 + 0.1 * jax.random.normal(kg2, (out_channels,), jnp.float32),
        "b2": 0.1 * jax.random.normal(kb2, (out_channels,), jnp.float32),
    }
    if in_channels != out_channels:
        params["ws"] = (jax.random.normal(k3, (in_channels, out_channels), jnp.float32)
                        * (1.0 / jnp.sqrt(jnp.float32(in_channels))))
    return params


def reference(x_nchw, params):
    """Pure-JAX reference of the PyTorch forward (training-mode BN)."""
    x = jnp.transpose(x_nchw, (0, 2, 3, 1)).astype(jnp.float32)

    def conv3x3(inp, w):
        return jax.lax.conv_general_dilated(
            inp, w, window_strides=(1, 1), padding="SAME",
            dimension_numbers=("NHWC", "HWIO", "NHWC"))

    def bn(inp, g, b):
        mean = jnp.mean(inp, axis=(0, 1, 2), keepdims=True)
        var = jnp.mean(jnp.square(inp - mean), axis=(0, 1, 2), keepdims=True)
        return (inp - mean) * jax.lax.rsqrt(var + BN_EPS) * g + b

    h = jax.nn.relu(bn(conv3x3(x, params["w1"]), params["g1"], params["b1"]))
    h = bn(conv3x3(h, params["w2"]), params["g2"], params["b2"])
    identity = (jnp.einsum("bhwc,cd->bhwd", x, params["ws"])
                if "ws" in params else x)
    out = jax.nn.relu(h + identity)
    return jnp.transpose(out, (0, 3, 1, 2))


if __name__ == "__main__":
    key = jax.random.PRNGKey(0)
    kx, kp, kx2, kp2 = jax.random.split(key, 4)

    # Case 1: projection shortcut (Cin != Cout).
    B, Cin, Cout, H, W = 2, 4, 8, 16, 16
    x = jax.random.normal(kx, (B, Cin, H, W), jnp.float32)       # NCHW like PyTorch
    params = init_params(kp, Cin, Cout)
    prep = prepare_params(params, W)       # one-time parameter-only transforms
    out = jax.block_until_ready(residual_block_nchw(x, prep))
    ref = reference(x, params)
    assert out.shape == (B, Cout, H, W), out.shape
    # bf16 MXU operands vs an f32 reference -> loose numeric tolerance.
    assert jnp.allclose(out, ref, atol=5e-2, rtol=5e-2), float(jnp.max(jnp.abs(out - ref)))

    # Case 2: identity shortcut (Cin == Cout) exercises the has_proj=False path.
    x2 = jax.random.normal(kx2, (B, 8, H, W), jnp.float32)
    params2 = init_params(kp2, 8, 8)
    prep2 = prepare_params(params2, W)
    out2 = jax.block_until_ready(residual_block_nchw(x2, prep2))
    ref2 = reference(x2, params2)
    assert out2.shape == (B, 8, H, W), out2.shape
    assert jnp.allclose(out2, ref2, atol=5e-2, rtol=5e-2), float(jnp.max(jnp.abs(out2 - ref2)))

    print("KERNEL_OK")
</pallas_src>

<mosaic_0001>
module attributes {stable_mosaic.version = 11 : i64} {
  func.func @_residual_block_kernel(%arg0: memref<32x128xf32, #tpu.memory_space<vmem>>, %arg1: memref<384x128xbf16, #tpu.memory_space<vmem>>, %arg2: memref<384x128xbf16, #tpu.memory_space<vmem>>, %arg3: memref<128x128xbf16, #tpu.memory_space<vmem>>, %arg4: memref<1x128xf32, #tpu.memory_space<vmem>>, %arg5: memref<1x128xf32, #tpu.memory_space<vmem>>, %arg6: memref<1x128xf32, #tpu.memory_space<vmem>>, %arg7: memref<1x128xf32, #tpu.memory_space<vmem>>, %arg8: memref<128x128xf32, #tpu.memory_space<vmem>>, %arg9: memref<32x128xf32, #tpu.memory_space<vmem>>) attributes {dimension_semantics = [], scalar_prefetch = 0 : i64, scratch_operands = 0 : i64, tpu.core_type = #tpu.core_type<tc>} {
    %c0 = arith.constant 0 : index
    %c0_0 = arith.constant 0 : index
    %0 = vector.load %arg0[%c0, %c0_0] : memref<32x128xf32, #tpu.memory_space<vmem>>, vector<32x128xf32>
    %1 = tpu.iota {dimensions = array<i32: 0>} : vector<32x128xi32>
    %c16_i32 = arith.constant 16 : i32
    %c0_i32 = arith.constant 0 : i32
    %2 = arith.cmpi eq, %c16_i32, %c0_i32 : i32
    %c1_i32 = arith.constant 1 : i32
    %3 = arith.select %2, %c1_i32, %c16_i32 : i32
    %4 = vector.broadcast %3 : i32 to vector<32x128xi32>
    %5 = arith.remsi %1, %4 : vector<32x128xi32>
    %c0_i32_1 = arith.constant 0 : i32
    %6 = vector.broadcast %c0_i32_1 : i32 to vector<32x128xi32>
    %7 = arith.cmpi ne, %5, %6 : vector<32x128xi32>
    %c0_i32_2 = arith.constant 0 : i32
    %8 = vector.broadcast %c0_i32_2 : i32 to vector<32x128xi32>
    %9 = arith.cmpi slt, %5, %8 : vector<32x128xi32>
    %c0_i32_3 = arith.constant 0 : i32
    %10 = arith.cmpi slt, %3, %c0_i32_3 : i32
    %11 = vector.broadcast %10 : i1 to vector<32x128xi1>
    %12 = vector.broadcast %11 : vector<32x128xi1> to vector<32x128xi1>
    %13 = arith.xori %9, %12 : vector<32x128xi1>
    %14 = arith.andi %13, %7 : vector<32x128xi1>
    %15 = vector.broadcast %3 : i32 to vector<32x128xi32>
    %16 = arith.addi %5, %15 : vector<32x128xi32>
    %17 = arith.select %14, %16, %5 : vector<32x128xi1>, vector<32x128xi32>
    %c0_i32_4 = arith.constant 0 : i32
    %18 = vector.broadcast %c0_i32_4 : i32 to vector<32x128xi32>
    %19 = arith.cmpi sgt, %17, %18 : vector<32x128xi32>
    %c1_i32_5 = arith.constant 1 : i32
    %20 = tpu.dynamic_rotate %0 by %c1_i32_5 dim 0 : vector<32x128xf32>, i32 -> vector<32x128xf32>
    %cst = arith.constant 0.000000e+00 : f32
    %21 = vector.broadcast %cst : f32 to vector<32x128xf32>
    %22 = arith.select %19, %20, %21 : vector<32x128xi1>, vector<32x128xf32>
    %c15_i32 = arith.constant 15 : i32
    %23 = vector.broadcast %c15_i32 : i32 to vector<32x128xi32>
    %24 = arith.cmpi slt, %17, %23 : vector<32x128xi32>
    %c31_i32 = arith.constant 31 : i32
    %25 = tpu.dynamic_rotate %0 by %c31_i32 dim 0 : vector<32x128xf32>, i32 -> vector<32x128xf32>
    %cst_6 = arith.constant 0.000000e+00 : f32
    %26 = vector.broadcast %cst_6 : f32 to vector<32x128xf32>
    %27 = arith.select %24, %25, %26 : vector<32x128xi1>, vector<32x128xf32>
    %28 = tpu.concatenate %22, %0, %27 in 1 : vector<32x128xf32>, vector<32x128xf32>, vector<32x128xf32> -> vector<32x384xf32>
    %29 = arith.truncf %28 : vector<32x384xf32> to vector<32x384xbf16>
    %c0_7 = arith.constant 0 : index
    %c0_8 = arith.constant 0 : index
    %30 = vector.load %arg1[%c0_7, %c0_8] : memref<384x128xbf16, #tpu.memory_space<vmem>>, vector<384x128xbf16>
    %cst_9 = arith.constant dense<0.000000e+00> : vector<32x128xf32>
    %31 = tpu.matmul %29, %30, %cst_9 {dimension_numbers = #tpu.dot_dimension_numbers<[1], [0], [0], [1], [0, 0, 1, 1], [], []>} : vector<32x384xbf16>, vector<384x128xbf16>, vector<32x128xf32> -> vector<32x128xf32>
    %cst_10 = arith.constant dense<0.000000e+00> : vector<128xf32>
    %32 = vector.multi_reduction <add>, %31, %cst_10 [0] : vector<32x128xf32> to vector<128xf32>
    %33 = vector.shape_cast %32 : vector<128xf32> to vector<1x128xf32>
    %34 = arith.mulf %31, %31 : vector<32x128xf32>
    %cst_11 = arith.constant dense<0.000000e+00> : vector<128xf32>
    %35 = vector.multi_reduction <add>, %34, %cst_11 [0] : vector<32x128xf32> to vector<128xf32>
    %36 = vector.shape_cast %35 : vector<128xf32> to vector<1x128xf32>
    %37 = tpu.concatenate %33, %36 in 0 : vector<1x128xf32>, vector<1x128xf32> -> vector<2x128xf32>
    %cst_12 = arith.constant 0.001953125 : f32
    %38 = vector.broadcast %cst_12 : f32 to vector<2x128xf32>
    %39 = arith.mulf %37, %38 : vector<2x128xf32>
    %c0_13 = arith.constant 0 : index
    %c0_14 = arith.constant 0 : index
    %40 = vector.load %arg8[%c0_13, %c0_14] : memref<128x128xf32, #tpu.memory_space<vmem>>, vector<128x128xf32>
    %cst_15 = arith.constant dense<0.000000e+00> : vector<2x128xf32>
    %41 = tpu.matmul %39, %40, %cst_15 {dimension_numbers = #tpu.dot_dimension_numbers<[1], [0], [0], [1], [0, 0, 1, 1], [], []>, precision = #tpu.contract_precision<fp32>} : vector<2x128xf32>, vector<128x128xf32>, vector<2x128xf32> -> vector<2x128xf32>
    %42 = vector.extract_strided_slice %41 {offsets = [0, 0], sizes = [1, 128], strides = [1, 1]} : vector<2x128xf32> to vector<1x128xf32>
    %43 = vector.extract_strided_slice %41 {offsets = [1, 0], sizes = [1, 128], strides = [1, 1]} : vector<2x128xf32> to vector<1x128xf32>
    %44 = arith.mulf %42, %42 : vector<1x128xf32>
    %45 = arith.subf %43, %44 : vector<1x128xf32>
    %cst_16 = arith.constant 9.99999974E-6 : f32
    %46 = vector.broadcast %cst_16 : f32 to vector<1x128xf32>
    %47 = arith.addf %45, %46 : vector<1x128xf32>
    %48 = math.rsqrt %47 : vector<1x128xf32>
    %49 = vector.broadcast %42 : vector<1x128xf32> to vector<32x128xf32>
    %50 = arith.subf %31, %49 : vector<32x128xf32>
    %c0_17 = arith.constant 0 : index
    %c0_18 = arith.constant 0 : index
    %51 = vector.load %arg4[%c0_17, %c0_18] : memref<1x128xf32, #tpu.memory_space<vmem>>, vector<1x128xf32>
    %52 = arith.mulf %48, %51 : vector<1x128xf32>
    %53 = vector.broadcast %52 : vector<1x128xf32> to vector<32x128xf32>
    %54 = arith.mulf %50, %53 : vector<32x128xf32>
    %c0_19 = arith.constant 0 : index
    %c0_20 = arith.constant 0 : index
    %55 = vector.load %arg5[%c0_19, %c0_20] : memref<1x128xf32, #tpu.memory_space<vmem>>, vector<1x128xf32>
    %56 = vector.broadcast %55 : vector<1x128xf32> to vector<32x128xf32>
    %57 = arith.addf %54, %56 : vector<32x128xf32>
    %cst_21 = arith.constant 0.000000e+00 : f32
    %58 = vector.broadcast %cst_21 : f32 to vector<32x128xf32>
    %59 = arith.maximumf %57, %58 : vector<32x128xf32>
    %60 = tpu.iota {dimensions = array<i32: 0>} : vector<32x128xi32>
    %c16_i32_22 = arith.constant 16 : i32
    %c0_i32_23 = arith.constant 0 : i32
    %61 = arith.cmpi eq, %c16_i32_22, %c0_i32_23 : i32
    %c1_i32_24 = arith.constant 1 : i32
    %62 = arith.select %61, %c1_i32_24, %c16_i32_22 : i32
    %63 = vector.broadcast %62 : i32 to vector<32x128xi32>
    %64 = arith.remsi %60, %63 : vector<32x128xi32>
    %c0_i32_25 = arith.constant 0 : i32
    %65 = vector.broadcast %c0_i32_25 : i32 to vector<32x128xi32>
    %66 = arith.cmpi ne, %64, %65 : vector<32x128xi32>
    %c0_i32_26 = arith.constant 0 : i32
    %67 = vector.broadcast %c0_i32_26 : i32 to vector<32x128xi32>
    %68 = arith.cmpi slt, %64, %67 : vector<32x128xi32>
    %c0_i32_27 = arith.constant 0 : i32
    %69 = arith.cmpi slt, %62, %c0_i32_27 : i32
    %70 = vector.broadcast %69 : i1 to vector<32x128xi1>
    %71 = vector.broadcast %70 : vector<32x128xi1> to vector<32x128xi1>
    %72 = arith.xori %68, %71 : vector<32x128xi1>
    %73 = arith.andi %72, %66 : vector<32x128xi1>
    %74 = vector.broadcast %62 : i32 to vector<32x128xi32>
    %75 = arith.addi %64, %74 : vector<32x128xi32>
    %76 = arith.select %73, %75, %64 : vector<32x128xi1>, vector<32x128xi32>
    %c0_i32_28 = arith.constant 0 : i32
    %77 = vector.broadcast %c0_i32_28 : i32 to vector<32x128xi32>
    %78 = arith.cmpi sgt, %76, %77 : vector<32x128xi32>
    %c1_i32_29 = arith.constant 1 : i32
    %79 = tpu.dynamic_rotate %59 by %c1_i32_29 dim 0 : vector<32x128xf32>, i32 -> vector<32x128xf32>
    %cst_30 = arith.constant 0.000000e+00 : f32
    %80 = vector.broadcast %cst_30 : f32 to vector<32x128xf32>
    %81 = arith.select %78, %79, %80 : vector<32x128xi1>, vector<32x128xf32>
    %c15_i32_31 = arith.constant 15 : i32
    %82 = vector.broadcast %c15_i32_31 : i32 to vector<32x128xi32>
    %83 = arith.cmpi slt, %76, %82 : vector<32x128xi32>
    %c31_i32_32 = arith.constant 31 : i32
    %84 = tpu.dynamic_rotate %59 by %c31_i32_32 dim 0 : vector<32x128xf32>, i32 -> vector<32x128xf32>
    %cst_33 = arith.constant 0.000000e+00 : f32
    %85 = vector.broadcast %cst_33 : f32 to vector<32x128xf32>
    %86 = arith.select %83, %84, %85 : vector<32x128xi1>, vector<32x128xf32>
    %87 = tpu.concatenate %81, %59, %86 in 1 : vector<32x128xf32>, vector<32x128xf32>, vector<32x128xf32> -> vector<32x384xf32>
    %88 = arith.truncf %87 : vector<32x384xf32> to vector<32x384xbf16>
    %c0_34 = arith.constant 0 : index
    %c0_35 = arith.constant 0 : index
    %89 = vector.load %arg2[%c0_34, %c0_35] : memref<384x128xbf16, #tpu.memory_space<vmem>>, vector<384x128xbf16>
    %cst_36 = arith.constant dense<0.000000e+00> : vector<32x128xf32>
    %90 = tpu.matmul %88, %89, %cst_36 {dimension_numbers = #tpu.dot_dimension_numbers<[1], [0], [0], [1], [0, 0, 1, 1], [], []>} : vector<32x384xbf16>, vector<384x128xbf16>, vector<32x128xf32> -> vector<32x128xf32>
    %cst_37 = arith.constant dense<0.000000e+00> : vector<128xf32>
    %91 = vector.multi_reduction <add>, %90, %cst_37 [0] : vector<32x128xf32> to vector<128xf32>
    %92 = vector.shape_cast %91 : vector<128xf32> to vector<1x128xf32>
    %93 = arith.mulf %90, %90 : vector<32x128xf32>
    %cst_38 = arith.constant dense<0.000000e+00> : vector<128xf32>
    %94 = vector.multi_reduction <add>, %93, %cst_38 [0] : vector<32x128xf32> to vector<128xf32>
    %95 = vector.shape_cast %94 : vector<128xf32> to vector<1x128xf32>
    %96 = tpu.concatenate %92, %95 in 0 : vector<1x128xf32>, vector<1x128xf32> -> vector<2x128xf32>
    %cst_39 = arith.constant 0.001953125 : f32
    %97 = vector.broadcast %cst_39 : f32 to vector<2x128xf32>
    %98 = arith.mulf %96, %97 : vector<2x128xf32>
    %c0_40 = arith.constant 0 : index
    %c0_41 = arith.constant 0 : index
    %99 = vector.load %arg8[%c0_40, %c0_41] : memref<128x128xf32, #tpu.memory_space<vmem>>, vector<128x128xf32>
    %cst_42 = arith.constant dense<0.000000e+00> : vector<2x128xf32>
    %100 = tpu.matmul %98, %99, %cst_42 {dimension_numbers = #tpu.dot_dimension_numbers<[1], [0], [0], [1], [0, 0, 1, 1], [], []>, precision = #tpu.contract_precision<fp32>} : vector<2x128xf32>, vector<128x128xf32>, vector<2x128xf32> -> vector<2x128xf32>
    %101 = vector.extract_strided_slice %100 {offsets = [0, 0], sizes = [1, 128], strides = [1, 1]} : vector<2x128xf32> to vector<1x128xf32>
    %102 = vector.extract_strided_slice %100 {offsets = [1, 0], sizes = [1, 128], strides = [1, 1]} : vector<2x128xf32> to vector<1x128xf32>
    %103 = arith.mulf %101, %101 : vector<1x128xf32>
    %104 = arith.subf %102, %103 : vector<1x128xf32>
    %cst_43 = arith.constant 9.99999974E-6 : f32
    %105 = vector.broadcast %cst_43 : f32 to vector<1x128xf32>
    %106 = arith.addf %104, %105 : vector<1x128xf32>
    %107 = math.rsqrt %106 : vector<1x128xf32>
    %108 = vector.broadcast %101 : vector<1x128xf32> to vector<32x128xf32>
    %109 = arith.subf %90, %108 : vector<32x128xf32>
    %c0_44 = arith.constant 0 : index
    %c0_45 = arith.constant 0 : index
    %110 = vector.load %arg6[%c0_44, %c0_45] : memref<1x128xf32, #tpu.memory_space<vmem>>, vector<1x128xf32>
    %111 = arith.mulf %107, %110 : vector<1x128xf32>
    %112 = vector.broadcast %111 : vector<1x128xf32> to vector<32x128xf32>
    %113 = arith.mulf %109, %112 : vector<32x128xf32>
    %c0_46 = arith.constant 0 : index
    %c0_47 = arith.constant 0 : index
    %114 = vector.load %arg7[%c0_46, %c0_47] : memref<1x128xf32, #tpu.memory_space<vmem>>, vector<1x128xf32>
    %115 = vector.broadcast %114 : vector<1x128xf32> to vector<32x128xf32>
    %116 = arith.addf %113, %115 : vector<32x128xf32>
    %117 = arith.truncf %0 : vector<32x128xf32> to vector<32x128xbf16>
    %c0_48 = arith.constant 0 : index
    %c0_49 = arith.constant 0 : index
    %118 = vector.load %arg3[%c0_48, %c0_49] : memref<128x128xbf16, #tpu.memory_space<vmem>>, vector<128x128xbf16>
    %cst_50 = arith.constant dense<0.000000e+00> : vector<32x128xf32>
    %119 = tpu.matmul %117, %118, %cst_50 {dimension_numbers = #tpu.dot_dimension_numbers<[1], [0], [0], [1], [0, 0, 1, 1], [], []>} : vector<32x128xbf16>, vector<128x128xbf16>, vector<32x128xf32> -> vector<32x128xf32>
    %120 = arith.addf %116, %119 : vector<32x128xf32>
    %cst_51 = arith.constant 0.000000e+00 : f32
    %121 = vector.broadcast %cst_51 : f32 to vector<32x128xf32>
    %122 = arith.maximumf %120, %121 : vector<32x128xf32>
    %c0_52 = arith.constant 0 : index
    %c0_53 = arith.constant 0 : index
    %123 = vector.load %arg9[%c0_52, %c0_53] : memref<32x128xf32, #tpu.memory_space<vmem>>, vector<32x128xf32>
    tpu.vector_store %arg9[%c0_52, %c0_53], %122 {strides = array<i32>} : memref<32x128xf32, #tpu.memory_space<vmem>>, vector<32x128xf32>,
    return
  }
}

</mosaic_0001>

<bundles_post_ra>
// kernel: tpu_custom_call.1
= control target key start
LH: loop header
LB: loop body
LE: loop exit
PB: predicated region body
PF: predicated region fallthrough
CT: control target
= control target key end

     0   :  { %14 = vsyncpa [#allocation3], 0  ;;  %s4342_s0 = inlined_call_operand.hbm [shape: f32[32,128], index: 0, kind: input, shape index: {}]   ;;  %s4343_s1 = inlined_call_operand.hbm [shape: bf16[384,128], index: 1, kind: input, shape index: {}]   ;;  %s4344_s2 = inlined_call_operand.hbm [shape: bf16[384,128], index: 2, kind: input, shape index: {}]   ;;  %s4345_s3 = inlined_call_operand.hbm [shape: bf16[128,128], index: 3, kind: input, shape index: {}]   ;;  %s4346_s4 = inlined_call_operand.vmem [shape: f32[1,128], index: 4, kind: input, shape index: {}]   ;;  %s4347_s5 = inlined_call_operand.vmem [shape: f32[1,128], index: 5, kind: input, shape index: {}]   ;;  %s4348_s6 = inlined_call_operand.vmem [shape: f32[1,128], index: 6, kind: input, shape index: {}]   ;;  %s4349_s7 = inlined_call_operand.vmem [shape: f32[1,128], index: 7, kind: input, shape index: {}]   ;;  %s4350_s8 = inlined_call_operand.hbm [shape: f32[128,128], index: 8, kind: input, shape index: {}]   ;;  %s4351_s9 = inlined_call_operand.hbm [shape: f32[32,128], index: 9, kind: output, shape index: {}]  }
   0x1   :  { %15 = vsyncpa [#allocation6], 0 }
   0x2   :  { %16 = vsyncpa [#allocation9], 0 }
   0x3   :  { %17 = vsyncpa [#allocation4], 0  ;;  %s3443_s30 = smov [#allocation5]  }
   0x4   :  { %s35_s10 = sshll.u32 %s3443_s30, 4  ;;  %s36_s10 = int_to_ptr.vmem [resolvable:$true] %s35_s10 }
   0x5   :  { %s3323_s11 = scalar_lea.vmem %s36_s10, 3072  ;;  %p3328_p1 = scmp.lt.s32.totalorder %s36_s10, %s36_s10 }
   0x6   :  { %p3324_p0 = scmp.ne.s32.totalorder %s36_s10, %s3323_s11  ;;  %p3329_p2 = scmp.lt.s32.totalorder %s3323_s11, %s3323_s11 }
   0x8   :  { %p3330_p3 = por %p3329_p2, %p3328_p1 }
   0xa   :  { %p3331_p4 = pnand %p3330_p3, %p3324_p0 }
   0xc   :  { %3334 = shalt.err (!%p3331_p4)
}
   0xd   :  { %s3444_s12 = smov 64   ;;  %s3445_s13 = smov 4  }
   0xe   :  { %41 = dma.hbm_to_vmem [thread:$0]  %s4343_s1, 3072, %s36_s10, [#allocation6], %s3444_s12, %s3444_s12, %s3445_s13  }
   0xf   :  { %s3446_s16 = smov [#allocation8]   ;;  %s3447_s18 = smov [#allocation2]  }
  0x10   :  { %s59_s17 = sshll.u32 %s3446_s16, 4  ;;  %s23_s19 = sshll.u32 %s3447_s18, 4  ;;  %s60_s17 = int_to_ptr.vmem [resolvable:$true] %s59_s17  ;;  %s24_s19 = int_to_ptr.vmem [resolvable:$true] %s23_s19 }
  0x11   :  { %s3343_s20 = scalar_lea.vmem %s60_s17, 1024  ;;  %p3348_p6 = scmp.lt.s32.totalorder %s60_s17, %s60_s17 }
  0x12   :  { %p3344_p5 = scmp.ne.s32.totalorder %s60_s17, %s3343_s20  ;;  %p3349_p7 = scmp.lt.s32.totalorder %s3343_s20, %s3343_s20 }
  0x14   :  { %p3350_p8 = por %p3349_p7, %p3348_p6 }
  0x16   :  { %p3351_p9 = pnand %p3350_p8, %p3344_p5 }
  0x18   :  { %3354 = shalt.err (!%p3351_p9)
}
  0x19   :  { %65 = dma.hbm_to_vmem [thread:$0]  %s4345_s3, 1024, %s60_s17, [#allocation9], %s3444_s12, %s3444_s12, %s3445_s13  }
  0x1a   :  { %s3363_s1 = scalar_lea.vmem %s24_s19, 512  ;;  %p3368_p11 = scmp.lt.s32.totalorder %s24_s19, %s24_s19 }
  0x1b   :  { %p3364_p10 = scmp.ne.s32.totalorder %s24_s19, %s3363_s1  ;;  %p3369_p12 = scmp.lt.s32.totalorder %s3363_s1, %s3363_s1 }
  0x1d   :  { %p3370_p13 = por %p3369_p12, %p3368_p11 }
  0x1f   :  { %p3371_p0 = pnand %p3370_p13, %p3364_p10 }
  0x21   :  { %3374 = shalt.err (!%p3371_p0)
}
  0x22   :  { %s3448_s23 = smov 128   ;;  %s3449_s24 = smov 8  }
  0x23   :  { %29 = dma.hbm_to_vmem [thread:$0]  %s4342_s0, 512, %s24_s19, [#allocation3], %s3448_s23, %s3448_s23, %s3449_s24  }
  0x24   :  { %s3450_s27 = smov [#allocation7]   ;;  %s3451_s3 = smov [#allocation10]  }
  0x25   :  { %s47_s28 = sshll.u32 %s3450_s27, 4  ;;  %s79_s29 = sshll.u32 %s3451_s3, 4  ;;  %s48_s28 = int_to_ptr.vmem [resolvable:$true] %s47_s28  ;;  %s80_s29 = int_to_ptr.vmem [resolvable:$true] %s79_s29 }
  0x26   :  { %s3383_s30 = scalar_lea.vmem %s48_s28, 3072  ;;  %p3388_p2 = scmp.lt.s32.totalorder %s48_s28, %s48_s28 }
  0x27   :  { %p3384_p1 = scmp.ne.s32.totalorder %s48_s28, %s3383_s30  ;;  %p3389_p3 = scmp.lt.s32.totalorder %s3383_s30, %s3383_s30 }
  0x29   :  { %p3390_p4 = por %p3389_p3, %p3388_p2 }
  0x2b   :  { %p3391_p5 = pnand %p3390_p4, %p3384_p1 }
  0x2d   :  { %3394 = shalt.err (!%p3391_p5)
}
  0x2e   :  { %53 = dma.hbm_to_vmem [thread:$0]  %s4344_s2, 3072, %s48_s28, [#allocation6], %s3444_s12, %s3444_s12, %s3445_s13  }
  0x2f   :  { %s3403_s0 = scalar_lea.vmem %s80_s29, 2048  ;;  %p3408_p7 = scmp.lt.s32.totalorder %s80_s29, %s80_s29 }
  0x30   :  { %p3404_p6 = scmp.ne.s32.totalorder %s80_s29, %s3403_s0  ;;  %p3409_p8 = scmp.lt.s32.totalorder %s3403_s0, %s3403_s0 }
  0x32   :  { %p3410_p9 = por %p3409_p8, %p3408_p7 }
  0x34   :  { %p3411_p10 = pnand %p3410_p9, %p3404_p6 }
  0x36   :  { %3414 = shalt.err (!%p3411_p10)
}
  0x37   :  { %85 = dma.hbm_to_vmem [thread:$0]  %s4350_s8, 2048, %s80_s29, [#allocation9], %s3448_s23, %s3448_s23, %s3449_s24  }
  0x38   :  { %3435 = dma.done.wait [#allocation3], 512  }
  0x39   :  { %3436 = vsyncadd [#allocation3], 4294966784 }
  0x3a   :  { %3437 = dma.done.wait [#allocation6], 6144  }
  0x3b   :  { %3438 = vsyncadd [#allocation6], 4294961152 }
  0x3c   :  { %3439 = dma.done.wait [#allocation9], 3072  }
  0x3d   :  { %3440 = vsyncadd [#allocation9], 4294964224  ;;  %v3255_v0 = vld [vmem:[#allocation5 + $0x78] sm:$0xff]   ;;  %v3257_v2 = vld [vmem:[#allocation5 + $0x70] sm:$0xff]   ;;  %v106_v8 = vlaneseq  ;;  %vm3452_vm5 = vmmov 1   ;;  %v4407_v38 = vmov 0 }
  0x3e   :  { %v3256_v1 = vld [vmem:[#allocation5 + $0x38] sm:$0xff]   ;;  %2472 = vmatprep.subr.bf16.mxu1 %v3255_v0  ;;  %v3258_v3 = vld [vmem:[#allocation5 + $0x30] sm:$0xff]   ;;  %v3259_v4 = vld [vmem:[#allocation5 + $0x68] sm:$0xff]   ;;  %v4411_v44 = vmov 0  ;;  %v4414_v45 = vmov 0  ;;  %v4417_v0 = vmov 0 }
  0x3f   :  { %2473 = vmatpush3.bf16.msra.mxu1 %v3256_v1  ;;  %v3260_v5 = vld [vmem:[#allocation5 + $0x28] sm:$0xff]   ;;  %v3261_v6 = vld [vmem:[#allocation5 + $0x60] sm:$0xff]   ;;  %v3263_v9 = vld [vmem:[#allocation5 + $0x58] sm:$0xff]   ;;  %v3536_v11 = vshrl.u32 %v106_v8, 7  ;;  %vm3454_vm11 = vmmov 0   ;;  %vm511_vm12 = vcmask 1040384  }
  0x40   :  { %2474 = vmatprep.subr.bf16.mxu1 %v3257_v2  ;;  %v3262_v7 = vld [vmem:[#allocation5 + $0x20] sm:$0xff]   ;;  %v3264_v10 = vld [vmem:[#allocation5 + $0x18] sm:$0xff]   ;;  %v3265_v12 = vld [vmem:[#allocation5 + $0x50] sm:$0xff]  }
  0x41   :  { %4401 = vst [vmem:[#allocation16_spill] sm:$0xff] %v3536_v11  ;;  %v3538_v13 = vld [vmem:[#allocation2] sm:$0xff]  ;;  %v103_v14 = vld [vmem:[#allocation2 + $0x8] sm:$0xff]  ;;  %v109_v15 = vadd.s32 16, %v3536_v11  ;;  %v108_v16 = vadd.s32 8, %v3536_v11  ;;  %v3266_v17 = vld [vmem:[#allocation5 + $0x10] sm:$0xff]  }
  0x42   :  { %v3267_v18 = vld [vmem:[#allocation5 + $0x48] sm:$0xff]   ;;  %v3543_v19 = vpack.c.bf16 %v103_v14, %v3538_v13  ;;  %v3545_v20 = vld [vmem:[#allocation2 + $0x18] sm:$0xff]  ;;  %v115_v21 = vand.u32 15, %v3536_v11  ;;  %v3269_v25 = vld [vmem:[#allocation5 + $0x40] sm:$0xff]   ;;  %v163_v26 = vrot.slane %v3538_v13, 7  ;;  %vm167_vm0 = vcmp.lt.s32.totalorder %v3536_v11, 1 }
  0x43   :  { %2475 = vmatpush3.bf16.msra.mxu1 %v3258_v3  ;;  %v129_v22 = vand.u32 15, %v109_v15  ;;  %v122_v23 = vand.u32 15, %v108_v16  ;;  %v3268_v24 = vld [vmem:[#allocation5 + $0x8] sm:$0xff]   ;;  %v164_v27 = vrot.slane %v103_v14, 7  ;;  %v166_v28 = vrot.slane %v3545_v20, 7  ;;  %v104_v29 = vld [vmem:[#allocation2 + $0x10] sm:$0xff] }
  0x44   :  { %2476 = vmatprep.subr.bf16.mxu1 %v3259_v4  ;;  %4402 = vst [vmem:[#allocation17_spill] sm:$0xff] %v3543_v19  ;;  %423 = vmatprep.mubr.bf16.mxu1 %v3543_v19  ;;  %vm159_vm1 = vcmp.gt.s32.totalorder %v115_v21, 0  ;;  %vm184_vm2 = vcmp.lt.s32.totalorder %v3536_v11, 7  ;;  %v3270_v32 = vld [vmem:[#allocation5] sm:$0xff]   ;;  %v180_v33 = vrot.slane %v3538_v13, 1  ;;  %v181_v34 = vrot.slane %v103_v14, 1 }
  0x45   :  { %vm3553_vm3 = vcmp.gt.s32.totalorder %v129_v22, 0  ;;  %vm3557_vm4 = vcmp.lt.s32.totalorder %v122_v23, 15  ;;  %v3271_v35 = vld [vmem:[#allocation5 + $0xb8] sm:$0xff]   ;;  %v170_v36 = vsel %vm167_vm0, %v163_v26, %v164_v27  ;;  %v171_v37 = vsel %vm167_vm0, %v166_v28, %v163_v26  ;;  %vm3567_vm6 = vmpackc.low %vm3452_vm5, %vm159_vm1  ;;  %v3272_v42 = vld [vmem:[#allocation5 + $0xb0] sm:$0xff]  }
  0x46   :  { %v4408_v38 = vsel %vm3567_vm6, 4294967295, %v4407_v38  ;;  %v165_v39 = vrot.slane %v104_v29, 7  ;;  %v182_v40 = vrot.slane %v104_v29, 1  ;;  %v2413_v41 = vpack.c.bf16 %v170_v36, %v171_v37  ;;  %vm3577_vm7 = vmpackc.low %vm3452_vm5, %vm3553_vm3  ;;  %v3273_v46 = vld [vmem:[#allocation5 + $0xa8] sm:$0xff]   ;;  %v3274_v51 = vld [vmem:[#allocation5 + $0xa0] sm:$0xff]  }
  0x47   :  { %2477 = vmatpush3.bf16.msra.mxu1 %v3260_v5  ;;  %4409 = vst [vmem:[#allocation18_spill] sm:$0xff] %v4408_v38  ;;  %v3572_v43 = vpack.c.bf16 %v3545_v20, %v104_v29  ;;  %v4412_v44 = vsel %vm3577_vm7, 4294967295, %v4411_v44  ;;  %vm3584_vm8 = vmpackc.low %vm3557_vm4, %vm3452_vm5  ;;  %v187_v50 = vsel %vm184_vm2, %v180_v33, %v181_v34  ;;  %v3275_v54 = vld [vmem:[#allocation5 + $0x98] sm:$0xff]   ;;  %v3276_v55 = vld [vmem:[#allocation5 + $0x90] sm:$0xff]   ;;  %v110_v57 = vadd.s32 24, %v3536_v11 }
  0x48   :  { %2478 = vmatprep.subr.bf16.mxu1 %v3261_v6  ;;  %4413 = vst [vmem:[#allocation20_spill] sm:$0xff] %v4412_v44  ;;  %v4415_v45 = vsel %vm3584_vm8, 4294967295, %v4414_v45  ;;  %v168_v47 = vsel %vm167_vm0, %v165_v39, %v166_v28  ;;  %v169_v48 = vsel %vm167_vm0, %v164_v27, %v165_v39  ;;  %v186_v49 = vsel %vm184_vm2, %v181_v34, %v182_v40  ;;  %v3277_v56 = vld [vmem:[#allocation5 + $0x88] sm:$0xff]   ;;  %v3278_v59 = vld [vmem:[#allocation5 + $0x80] sm:$0xff]   ;;  %v529_v1 = vld [vmem:[#allocation10 + $0x78] sm:$0xff] }
  0x49   :  { %4410 = vst [vmem:[#allocation19_spill] sm:$0xff] %v3572_v43  ;;  %4416 = vst [vmem:[#allocation21_spill] sm:$0xff] %v4415_v45  ;;  %v2416_v52 = vpack.c.bf16 %v168_v47, %v169_v48  ;;  %v2419_v53 = vpack.c.bf16 %v186_v49, %v187_v50  ;;  %v183_v58 = vrot.slane %v3545_v20, 1  ;;  %v136_v60 = vand.u32 15, %v110_v57  ;;  %v528_v3 = vld [vmem:[#allocation10 + $0x70] sm:$0xff]  ;;  %v527_v6 = vld [vmem:[#allocation10 + $0x68] sm:$0xff] }
  0x4a   :  { %v3616_v2 = vand.u32 4294901760, %v529_v1  ;;  %v3621_v5 = vand.u32 4294901760, %v528_v3  ;;  %v525_v16 = vld [vmem:[#allocation10 + $0x58] sm:$0xff]  ;;  %v4382_v21 = vmov 0.0   ;;  %v523_v30 = vld [vmem:[#allocation10 + $0x48] sm:$0xff]  ;;  %v522_v36 = vld [vmem:[#allocation10 + $0x40] sm:$0xff] }
  0x4b   :  { %2479 = vmatpush3.bf16.msra.mxu1 %v3262_v7  ;;  %v188_v61 = vsel %vm184_vm2, %v183_v58, %v180_v33  ;;  %v185_v62 = vsel %vm184_vm2, %v182_v40, %v183_v58  ;;  %vm179_vm9 = vcmp.lt.s32.totalorder %v136_v60, 15  ;;  %2782 = vmatprep.subr.mxu0 %v4382_v21  ;;  %v3653_v23 = vand.u32 4294901760, %v525_v16  ;;  %v519_v58 = vld [vmem:[#allocation10 + $0x28] sm:$0xff]  ;;  %v514_v19 = vld [vmem:[#allocation10] sm:$0xff] }
  0x4c   :  { %2480 = vmatprep.subr.bf16.mxu1 %v3263_v9  ;;  %v2422_v63 = vpack.c.bf16 %v188_v61, %v185_v62  ;;  %vm3610_vm10 = vmpackc.low %vm179_vm9, %vm3452_vm5  ;;  %v3619_v4 = vsub.f32 %v529_v1, %v3616_v2  ;;  %v3627_v8 = vsub.f32 %v528_v3, %v3621_v5  ;;  %v3629_v9 = vand.u32 4294901760, %v527_v6  ;;  %2783 = vmatpush3.msra.mxu0 %v3616_v2  ;;  %v518_v1 = vld [vmem:[#allocation10 + $0x20] sm:$0xff] }
  0x4d   :  { %v4418_v0 = vsel %vm3610_vm10, 4294967295, %v4417_v0  ;;  %v3668_v29 = vsub.f32 %v525_v16, %v3653_v23  ;;  %2784 = vmatprep.subr.mxu0 %v4382_v21  ;;  %v3678_v33 = vand.u32 4294901760, %v523_v30  ;;  %v3695_v40 = vand.u32 4294901760, %v522_v36  ;;  %2814 = vmatprep.mubr.msk.f32.mxu0 %vm3454_vm11, %v4382_v21 }
  0x4e   :  { %4419 = vst [vmem:[#allocation22_spill] sm:$0xff] %v4418_v0  ;;  %v3624_v7 = vand.u32 4294901760, %v3619_v4  ;;  %v3634_v13 = vand.u32 4294901760, %v3627_v8  ;;  %v3637_v14 = vsub.f32 %v527_v6, %v3629_v9  ;;  %2785 = vmatpush3.msra.mxu0 %v3621_v5  ;;  %v3743_v62 = vand.u32 4294901760, %v519_v58 }
  0x4f   :  { %2481 = vmatpush3.bf16.msra.mxu1 %v3264_v10  ;;  %v526_v10 = vld [vmem:[#allocation10 + $0x60] sm:$0xff]  ;;  %2786 = vmatprep.subr.mxu0 %v4382_v21  ;;  %v3693_v39 = vsub.f32 %v523_v30, %v3678_v33  ;;  %v3710_v49 = vsub.f32 %v522_v36, %v3695_v40 }
  0x50   :  { %2482 = vmatprep.subr.bf16.mxu1 %v3265_v12  ;;  %v625_v12 = vsub.f32 %v3619_v4, %v3624_v7  ;;  %v3639_v15 = vand.u32 4294901760, %v526_v10  ;;  %v3646_v20 = vand.u32 4294901760, %v3637_v14  ;;  %2787 = vmatpush3.msra.mxu0 %v3629_v9 }
  0x51   :  { %2788 = vmatprep.subr.mxu0 %v4382_v21  ;;  %v3706_v48 = vand.u32 4294901760, %v3693_v39 }
  0x52   :  { %v3650_v22 = vsub.f32 %v526_v10, %v3639_v15  ;;  %v639_v26 = vsub.f32 %v3637_v14, %v3646_v20  ;;  %2789 = vmatpush3.msra.mxu0 %v3639_v15  ;;  %v3757_v10 = vsub.f32 %v519_v58, %v3743_v62 }
  0x53   :  { %2483 = vmatpush3.bf16.msra.mxu1 %v3266_v17  ;;  %v3641_v17 = vand.u32 4294901760, %v625_v12  ;;  %4425 = vst [vmem:[#allocation28_spill] sm:$0xff] %v3706_v48  ;;  %2790 = vmatprep.subr.mxu0 %v4382_v21  ;;  %v3759_v12 = vand.u32 4294901760, %v518_v1 }
  0x54   :  { %2484 = vmatprep.subr.bf16.mxu1 %v3267_v18  ;;  %v632_v18 = vsub.f32 %v3627_v8, %v3634_v13  ;;  %v3665_v28 = vand.u32 4294901760, %v3650_v22  ;;  %v3672_v31 = vand.u32 4294901760, %v639_v26  ;;  %2791 = vmatpush3.msra.mxu0 %v3653_v23  ;;  %v3770_v26 = vand.u32 4294901760, %v3757_v10 }
  0x55   :  { %4420 = vst [vmem:[#allocation23_spill] sm:$0xff] %v3641_v17  ;;  %2792 = vmatprep.subr.mxu0 %v4382_v21  ;;  %v3774_v30 = vsub.f32 %v518_v1, %v3759_v12 }
  0x56   :  { %4422 = vst [vmem:[#allocation25_spill] sm:$0xff] %v3672_v31  ;;  %v646_v34 = vsub.f32 %v3650_v22, %v3665_v28  ;;  %4434 = vst [vmem:[#allocation37_spill] sm:$0xff] %v3770_v26 }
  0x57   :  { %2485 = vmatpush3.bf16.msra.mxu1 %v3268_v24  ;;  %v524_v24 = vld [vmem:[#allocation10 + $0x50] sm:$0xff] }
  0x58   :  { %2486 = vmatprep.subr.bf16.mxu1 %v3269_v25  ;;  %v3656_v25 = vand.u32 4294901760, %v632_v18  ;;  %v3661_v27 = vand.u32 4294901760, %v524_v24  ;;  %v517_v18 = vld [vmem:[#allocation10 + $0x18] sm:$0xff] }
  0x5a   :  { %4421 = vst [vmem:[#allocation24_spill] sm:$0xff] %v3656_v25  ;;  %2793 = vmatpush3.msra.mxu0 %v3661_v27 }
  0x5b   :  { %2487 = vmatpush3.bf16.msra.mxu1 %v3270_v32  ;;  %v3676_v32 = vsub.f32 %v524_v24, %v3661_v27  ;;  %2794 = vmatprep.subr.mxu0 %v4382_v21 }
  0x5c   :  { %2762 = vmatprep.subr.bf16.mxu1 %v3271_v35  ;;  %2795 = vmatpush3.msra.mxu0 %v3678_v33 }
  0x5d   :  { %v3689_v37 = vand.u32 4294901760, %v3676_v32  ;;  %2796 = vmatprep.subr.mxu0 %v4382_v21 }
  0x5e   :  { %2414 = vmatmul.mubr.msk.bf16.vlgmr.msra.gmra.mxu1 %vm3567_vm6, %v2413_v41  ;;  %v3698_v41 = vand.u32 4294901760, %v646_v34  ;;  %2797 = vmatpush3.msra.mxu0 %v3695_v40  ;;  %v3776_v34 = vand.u32 4294901760, %v517_v18 }
  0x5f   :  { %2763 = vmatpush3.bf16.msra.mxu1 %v3271_v35  ;;  %431 = vmatprep.mubr.bf16.mxu1 %v3572_v43  ;;  %v3684_v35 = vand.u32 4294901760, %v3668_v29  ;;  %4423 = vst [vmem:[#allocation26_spill] sm:$0xff] %v3689_v37  ;;  %v660_v47 = vsub.f32 %v3676_v32, %v3689_v37 }
  0x60   :  { %2764 = vmatprep.subr.bf16.mxu1 %v3272_v42  ;;  %4424 = vst [vmem:[#allocation27_spill] sm:$0xff] %v3698_v41  ;;  %2798 = vmatprep.subr.mxu0 %v4382_v21 }
  0x63   :  { %2765 = vmatpush3.bf16.msra.mxu1 %v3272_v42  ;;  %v653_v42 = vsub.f32 %v3668_v29, %v3684_v35 }
  0x64   :  { %2766 = vmatprep.subr.bf16.mxu1 %v3273_v46 }
  0x66   :  { %2417 = vmatmul.mubr.msk.bf16.gmra.mxu1 %vm3577_vm7, %v2416_v52  ;;  %v520_v52 = vld [vmem:[#allocation10 + $0x30] sm:$0xff] }
  0x67   :  { %2767 = vmatpush3.bf16.msra.mxu1 %v3273_v46  ;;  %2778 = vmatprep.mubr.msk.bf16.mxu1 %vm3584_vm8, %v2419_v53  ;;  %v521_v46 = vld [vmem:[#allocation10 + $0x38] sm:$0xff]  ;;  %v3719_v53 = vand.u32 4294901760, %v660_v47  ;;  %v3732_v57 = vand.u32 4294901760, %v520_v52  ;;  %v3786_v47 = vand.u32 4294901760, %v3774_v30 }
  0x68   :  { %2768 = vmatprep.subr.bf16.mxu1 %v3274_v51  ;;  %v3712_v50 = vand.u32 4294901760, %v521_v46 }
  0x69   :  { %4427 = vst [vmem:[#allocation30_spill] sm:$0xff] %v3719_v53  ;;  %4435 = vst [vmem:[#allocation38_spill] sm:$0xff] %v3786_v47 }
  0x6a   :  { %2799 = vmatpush3.msra.mxu0 %v3712_v50 }
  0x6b   :  { %2769 = vmatpush3.bf16.msra.mxu1 %v3274_v51  ;;  %v3715_v51 = vand.u32 4294901760, %v653_v42  ;;  %v516_v42 = vld [vmem:[#allocation10 + $0x10] sm:$0xff]  ;;  %2800 = vmatprep.subr.mxu0 %v4382_v21 }
  0x6c   :  { %2770 = vmatprep.subr.bf16.mxu1 %v3275_v54  ;;  %2801 = vmatpush3.msra.mxu0 %v3732_v57 }
  0x6d   :  { %4426 = vst [vmem:[#allocation29_spill] sm:$0xff] %v3715_v51  ;;  %2802 = vmatprep.subr.mxu0 %v4382_v21 }
  0x6e   :  { %2803 = vmatpush3.msra.mxu0 %v3743_v62 }
  0x6f   :  { %2771 = vmatpush3.bf16.msra.mxu1 %v3275_v54  ;;  %v667_v54 = vsub.f32 %v3693_v39, %v3706_v48  ;;  %2804 = vmatprep.subr.mxu0 %v4382_v21 }
  0x70   :  { %2772 = vmatprep.subr.bf16.mxu1 %v3276_v55  ;;  %2805 = vmatpush3.msra.mxu0 %v3759_v12 }
  0x71   :  { %2806 = vmatprep.subr.mxu0 %v4382_v21 }
  0x72   :  { %2807 = vmatpush3.msra.mxu0 %v3776_v34 }
  0x73   :  { %2773 = vmatpush3.bf16.msra.mxu1 %v3276_v55  ;;  %v3724_v55 = vand.u32 4294901760, %v3710_v49  ;;  %2808 = vmatprep.subr.mxu0 %v4382_v21 }
  0x74   :  { %2774 = vmatprep.subr.bf16.mxu1 %v3277_v56 }
  0x75   :  { %4428 = vst [vmem:[#allocation31_spill] sm:$0xff] %v3724_v55  ;;  %v674_v60 = vsub.f32 %v3710_v49, %v3724_v55 }
  0x77   :  { %2775 = vmatpush3.bf16.msra.mxu1 %v3277_v56  ;;  %v3728_v56 = vsub.f32 %v521_v46, %v3712_v50  ;;  %v3751_v3 = vand.u32 4294901760, %v674_v60  ;;  %v695_v46 = vsub.f32 %v3757_v10, %v3770_v26  ;;  %v515_v60 = vld [vmem:[#allocation10 + $0x8] sm:$0xff] }
  0x78   :  { %2776 = vmatprep.subr.bf16.mxu1 %v3278_v59 }
  0x79   :  { %v3740_v61 = vand.u32 4294901760, %v3728_v56  ;;  %4431 = vst [vmem:[#allocation34_spill] sm:$0xff] %v3751_v3  ;;  %v3799_v1 = vand.u32 4294901760, %v695_v46 }
  0x7b   :  { %2777 = vmatpush3.bf16.msra.mxu1 %v3278_v59  ;;  %v3735_v59 = vand.u32 4294901760, %v667_v54  ;;  %4430 = vst [vmem:[#allocation33_spill] sm:$0xff] %v3740_v61  ;;  %v681_v6 = vsub.f32 %v3728_v56, %v3740_v61  ;;  %v3792_v54 = vand.u32 4294901760, %v516_v42  ;;  %4437 = vst [vmem:[#allocation40_spill] sm:$0xff] %v3799_v1 }
  0x7c   :  { %2817 = vmatprep.subr.mxu1 %v4382_v21 }
  0x7d   :  { %4429 = vst [vmem:[#allocation32_spill] sm:$0xff] %v3735_v59  ;;  %v3767_v24 = vand.u32 4294901760, %v681_v6  ;;  %v702_v6 = vsub.f32 %v3774_v30, %v3786_v47  ;;  %2809 = vmatpush3.msra.mxu0 %v3792_v54 }
  0x7e   :  { %2779 = vmatmul.mubr.msk.bf16.vlgmr.msra.gmra.mxu1 %vm3610_vm10, %v2422_v63  ;;  %v3747_v63 = vsub.f32 %v520_v52, %v3732_v57  ;;  %v3790_v52 = vsub.f32 %v517_v18, %v3776_v34  ;;  %v3808_v18 = vsub.f32 %v516_v42, %v3792_v54  ;;  %v3823_v42 = vand.u32 4294901760, %v514_v19  ;;  %2810 = vmatprep.subr.mxu0 %v4382_v21 }
  0x7f   :  { %2818 = vmatpush3.msra.mxu1 %v3641_v17  ;;  %4433 = vst [vmem:[#allocation36_spill] sm:$0xff] %v3767_v24  ;;  %v3815_v46 = vand.u32 4294901760, %v702_v6  ;;  %2849 = vmatprep.mubr.msk.f32.mxu1 %vm3454_vm11, %v4382_v21 }
  0x80   :  { %2819 = vmatprep.subr.mxu1 %v4382_v21  ;;  %v3763_v16 = vand.u32 4294901760, %v3747_v63  ;;  %v3804_v43 = vand.u32 4294901760, %v3790_v52 }
  0x81   :  { %2820 = vmatpush3.msra.mxu1 %v3656_v25  ;;  %4439 = vst [vmem:[#allocation42_spill] sm:$0xff] %v3815_v46 }
  0x82   :  { %2821 = vmatprep.subr.mxu1 %v4382_v21  ;;  %4432 = vst [vmem:[#allocation35_spill] sm:$0xff] %v3763_v16  ;;  %v688_v36 = vsub.f32 %v3747_v63, %v3763_v16  ;;  %4438 = vst [vmem:[#allocation41_spill] sm:$0xff] %v3804_v43 }
  0x83   :  { %2822 = vmatpush3.msra.mxu1 %v3672_v31 }
  0x84   :  { %2823 = vmatprep.subr.mxu1 %v4382_v21  ;;  %v3795_v58 = vand.u32 4294901760, %v688_v36  ;;  %v3812_v36 = vand.u32 4294901760, %v515_v60 }
  0x85   :  { %2824 = vmatpush3.msra.mxu1 %v3698_v41 }
  0x86   :  { %2825 = vmatprep.subr.mxu1 %v4382_v21  ;;  %4436 = vst [vmem:[#allocation39_spill] sm:$0xff] %v3795_v58  ;;  %2811 = vmatpush3.msra.mxu0 %v3812_v36 }
  0x87   :  { %2826 = vmatpush3.msra.mxu1 %v3715_v51  ;;  %2812 = vmatprep.subr.mxu0 %v4382_v21 }
  0x88   :  { %2827 = vmatprep.subr.mxu1 %v4382_v21  ;;  %2813 = vmatpush3.msra.mxu0 %v3823_v42 }
  0x89   :  { %2828 = vmatpush3.msra.mxu1 %v3719_v53  ;;  %v3837_v53 = vsub.f32 %v514_v19, %v3823_v42  ;;  %2852 = vmatprep.subr.mxu0 %v4382_v21 }
  0x8a   :  { %2829 = vmatprep.subr.mxu1 %v4382_v21 }
  0x8b   :  { %2830 = vmatpush3.msra.mxu1 %v3735_v59 }
  0x8c   :  { %2831 = vmatprep.subr.mxu1 %v4382_v21 }
  0x8d   :  { %2832 = vmatpush3.msra.mxu1 %v3751_v3  ;;  %v3820_v3 = vand.u32 4294901760, %v3808_v18 }
  0x8e   :  { %2833 = vmatprep.subr.mxu1 %v4382_v21 }
  0x8f   :  { %2834 = vmatpush3.msra.mxu1 %v3767_v24  ;;  %v709_v24 = vsub.f32 %v3790_v52, %v3804_v43  ;;  %4440 = vst [vmem:[#allocation43_spill] sm:$0xff] %v3820_v3  ;;  %v716_v59 = vsub.f32 %v3808_v18, %v3820_v3 }
  0x90   :  { %2835 = vmatprep.subr.mxu1 %v4382_v21 }
  0x91   :  { %2836 = vmatpush3.msra.mxu1 %v3795_v58  ;;  %v3827_v58 = vsub.f32 %v515_v60, %v3812_v36  ;;  %v3831_v6 = vand.u32 4294901760, %v709_v24  ;;  %v3845_v60 = vand.u32 4294901760, %v716_v59  ;;  %v3848_v24 = vand.u32 4294901760, %v3837_v53 }
  0x92   :  { %2837 = vmatprep.subr.mxu1 %v4382_v21 }
  0x93   :  { %2838 = vmatpush3.msra.mxu1 %v3799_v1  ;;  %4441 = vst [vmem:[#allocation44_spill] sm:$0xff] %v3831_v6  ;;  %v3841_v1 = vand.u32 4294901760, %v3827_v58  ;;  %4443 = vst [vmem:[#allocation46_spill] sm:$0xff] %v3845_v60  ;;  %v730_v59 = vsub.f32 %v3837_v53, %v3848_v24 }
  0x94   :  { %2839 = vmatprep.subr.mxu1 %v4382_v21  ;;  %4444 = vst [vmem:[#allocation47_spill] sm:$0xff] %v3848_v24 }
  0x95   :  { %2840 = vmatpush3.msra.mxu1 %v3815_v46  ;;  %4442 = vst [vmem:[#allocation45_spill] sm:$0xff] %v3841_v1  ;;  %v723_v19 = vsub.f32 %v3827_v58, %v3841_v1 }
  0x96   :  { %2841 = vmatprep.subr.mxu1 %v4382_v21 }
  0x97   :  { %2842 = vmatpush3.msra.mxu1 %v3831_v6  ;;  %v3861_v46 = vand.u32 4294901760, %v723_v19  ;;  %v3865_v6 = vand.u32 4294901760, %v730_v59 }
  0x98   :  { %2843 = vmatprep.subr.mxu1 %v4382_v21 }
  0x99   :  { %2844 = vmatpush3.msra.mxu1 %v3845_v60  ;;  %4445 = vst [vmem:[#allocation48_spill] sm:$0xff] %v3861_v46  ;;  %4446 = vst [vmem:[#allocation49_spill] sm:$0xff] %v3865_v6 }
  0x9a   :  { %2845 = vmatprep.subr.mxu1 %v4382_v21 }
  0x9b   :  { %2846 = vmatpush3.msra.mxu1 %v3861_v46 }
  0x9c   :  { %2847 = vmatprep.subr.mxu1 %v4382_v21 }
  0x9d   :  { %2848 = vmatpush3.msra.mxu1 %v3865_v6 }
  0x9e   :  { %2887 = vmatprep.subr.mxu1 %v4382_v21 }
 0x11e   :  { %v2488_v19 = vpop.f32.mrf.mxu1 }
 0x120   :  { %v2489_v59 = vpop.f32.mrf.mxu1 }
 0x121   :  { %v2490_v6 = vadd.f32 %v2489_v59, %v2488_v19 }
 0x122   :  { %v2491_v46 = vpop.f32.mrf.mxu1 }
 0x124   :  { %v2492_v60 = vpop.f32.mrf.mxu1 }
 0x125   :  { %v2493_v45 = vadd.f32 %v2492_v60, %v2491_v46 }
 0x126   :  { %v2494_v51 = vpop.f32.mrf.mxu1 }
 0x128   :  { %v2495_v41 = vpop.f32.mrf.mxu1 }
 0x129   :  { %v2496_v38 = vadd.f32 %v2495_v41, %v2494_v51 }
 0x12a   :  { %v2497_v44 = vpop.f32.mrf.mxu1 }
 0x12c   :  { %v2498_v31 = vpop.f32.mrf.mxu1 }
 0x12d   :  { %v2499_v1 = vadd.f32 %v2498_v31, %v2497_v44 }
 0x13e   :  { %v2780_v25 = vpop.f32.mrf.mxu1 }
 0x13f   :  { %v3880_v3 = vadd.f32 %v2780_v25, %v2496_v38 }
 0x140   :  { %v474_v17 = vpop.f32.mrf.mxu1 }
 0x141   :  { %v3878_v11 = vadd.f32 %v2490_v6, %v474_v17  ;;  %4448 = vst [vmem:[#allocation51_spill] sm:$0xff] %v3880_v3  ;;  %v500_v17 = vmul.f32 %v3880_v3, %v3880_v3 }
 0x142   :  { %v2781_v0 = vpop.f32.mrf.mxu1 }
 0x143   :  { %4447 = vst [vmem:[#allocation50_spill] sm:$0xff] %v3878_v11  ;;  %v498_v43 = vmul.f32 %v3878_v11, %v3878_v11  ;;  %v3886_v47 = vadd.f32 %v2781_v0, %v2499_v1 }
 0x144   :  { %v477_v24 = vpop.f32.mrf.mxu1 }
 0x145   :  { %v3882_v21 = vadd.f32 %v2493_v45, %v477_v24  ;;  %v501_v45 = vmul.f32 %v3886_v47, %v3886_v47 }
 0x147   :  { %4449 = vst [vmem:[#allocation52_spill] sm:$0xff] %v3882_v21  ;;  %v489_v26 = vadd.f32 %v3882_v21, %v3878_v11  ;;  %v499_v46 = vmul.f32 %v3882_v21, %v3882_v21 }
 0x149   :  { %v490_v44 = vadd.f32 %v489_v26, %v3880_v3  ;;  %v502_v38 = vadd.f32 %v499_v46, %v498_v43 }
 0x14b   :  { %v491_v25 = vadd.f32 %v490_v44, %v3886_v47  ;;  %v503_v31 = vadd.f32 %v502_v38, %v500_v17  ;;  %v4450_v44 = vmov 0.0  }
 0x14d   :  { %v492_v0 = vrot.slane %v491_v25, 4  ;;  %v504_v41 = vadd.f32 %v503_v31, %v501_v45  ;;  %v4452_v45 = vld [vmem:[#allocation37_spill] sm:$0xff] }
 0x14e   :  { %v4454_v31 = vld [vmem:[#allocation41_spill] sm:$0xff] }
 0x14f   :  { %v493_v51 = vadd.f32 %v492_v0, %v491_v25  ;;  %v505_v1 = vrot.slane %v504_v41, 4  ;;  %v4453_v25 = vld [vmem:[#allocation38_spill] sm:$0xff]  ;;  %v4455_v0 = vld [vmem:[#allocation43_spill] sm:$0xff] }
 0x151   :  { %v494_v6 = vrot.slane %v493_v51, 2  ;;  %v506_v60 = vadd.f32 %v505_v1, %v504_v41  ;;  %v4456_v41 = vld [vmem:[#allocation45_spill] sm:$0xff]  ;;  %v3279_v1 = vld [vmem:[#allocation7 + $0x78] sm:$0xff]  }
 0x153   :  { %v495_v24 = vadd.f32 %v494_v6, %v493_v51  ;;  %v507_v19 = vrot.slane %v506_v60, 2  ;;  %v4457_v51 = vld [vmem:[#allocation47_spill] sm:$0xff] }
 0x154   :  { %v3280_v6 = vld [vmem:[#allocation7 + $0x38] sm:$0xff]  }
 0x155   :  { %v496_v59 = vrot.slane %v495_v24, 1  ;;  %v508_v21 = vadd.f32 %v507_v19, %v506_v60  ;;  %v3281_v60 = vld [vmem:[#allocation7 + $0xb8] sm:$0xff]   ;;  %v3283_v19 = vld [vmem:[#allocation7 + $0x30] sm:$0xff]  }
 0x157   :  { %v509_v11 = vrot.slane %v508_v21, 1  ;;  %v497_v26 = vadd.f32 %v496_v59, %v495_v24  ;;  %v3282_v24 = vld [vmem:[#allocation7 + $0x70] sm:$0xff]  }
 0x158   :  { %v3284_v59 = vld [vmem:[#allocation7 + $0xb0] sm:$0xff]  }
 0x159   :  { %v510_v43 = vadd.f32 %v509_v11, %v508_v21 }
 0x15b   :  { %v512_v46 = vsel %vm511_vm12, %v497_v26, %v510_v43  ;;  %v3285_v26 = vld [vmem:[#allocation7 + $0x68] sm:$0xff]  }
 0x15c   :  { %v513_v3 = vmul.f32 0.001953125, %v512_v46  ;;  %v3286_v43 = vld [vmem:[#allocation7 + $0x28] sm:$0xff]  }
 0x15d   :  { %v3287_v46 = vld [vmem:[#allocation7 + $0xa8] sm:$0xff]  }
 0x15e   :  { %v3899_v16 = vand.u32 4294901760, %v513_v3 }
 0x160   :  { %2850 = vmatmul.mubr.f32.vlgmr.msra.gmra.mxu1 %v3899_v16  ;;  %v3903_v17 = vsub.f32 %v513_v3, %v3899_v16  ;;  %v4451_v3 = vld [vmem:[#allocation35_spill] sm:$0xff] }
 0x161   :  { %2888 = vmatpush3.msra.mxu1 %v3616_v2  ;;  %2919 = vmatprep.mubr.msk.f32.mxu1 %vm3454_vm11, %v4450_v44 }
 0x162   :  { %2889 = vmatprep.subr.mxu1 %v4450_v44  ;;  %v613_v38 = vand.u32 4294901760, %v3903_v17 }
 0x163   :  { %2890 = vmatpush3.msra.mxu1 %v3621_v5 }
 0x164   :  { %2891 = vmatprep.subr.mxu1 %v4450_v44  ;;  %v614_v11 = vsub.f32 %v3903_v17, %v613_v38 }
 0x165   :  { %2892 = vmatpush3.msra.mxu1 %v3629_v9 }
 0x166   :  { %2893 = vmatprep.subr.mxu1 %v4450_v44  ;;  %v615_v21 = vand.u32 4294901760, %v614_v11  ;;  %v3291_v11 = vld [vmem:[#allocation7 + $0x58] sm:$0xff]  }
 0x167   :  { %2894 = vmatpush3.msra.mxu1 %v3639_v15 }
 0x168   :  { %2895 = vmatprep.subr.mxu1 %v4450_v44  ;;  %2815 = vmatmul.mubr.f32.vlgmr.msra.gmra.mxu0 %v615_v21  ;;  %v3292_v21 = vld [vmem:[#allocation7 + $0x18] sm:$0xff]  }
 0x169   :  { %2853 = vmatpush3.msra.mxu0 %v3619_v4  ;;  %2896 = vmatpush3.msra.mxu1 %v3653_v23 }
 0x16a   :  { %2854 = vmatprep.subr.mxu0 %v4450_v44  ;;  %2897 = vmatprep.subr.mxu1 %v4450_v44 }
 0x16b   :  { %2855 = vmatpush3.msra.mxu0 %v3627_v8  ;;  %2898 = vmatpush3.msra.mxu1 %v3661_v27 }
 0x16c   :  { %2856 = vmatprep.subr.mxu0 %v4450_v44  ;;  %2899 = vmatprep.subr.mxu1 %v4450_v44 }
 0x16d   :  { %2857 = vmatpush3.msra.mxu0 %v3637_v14  ;;  %2900 = vmatpush3.msra.mxu1 %v3678_v33 }
 0x16e   :  { %2858 = vmatprep.subr.mxu0 %v4450_v44  ;;  %2901 = vmatprep.subr.mxu1 %v4450_v44 }
 0x16f   :  { %2859 = vmatpush3.msra.mxu0 %v3650_v22  ;;  %2902 = vmatpush3.msra.mxu1 %v3695_v40 }
 0x170   :  { %2860 = vmatprep.subr.mxu0 %v4450_v44  ;;  %2903 = vmatprep.subr.mxu1 %v4450_v44 }
 0x171   :  { %2861 = vmatpush3.msra.mxu0 %v3668_v29  ;;  %2904 = vmatpush3.msra.mxu1 %v3712_v50 }
 0x172   :  { %2862 = vmatprep.subr.mxu0 %v4450_v44  ;;  %2905 = vmatprep.subr.mxu1 %v4450_v44 }
 0x173   :  { %2863 = vmatpush3.msra.mxu0 %v3676_v32  ;;  %2906 = vmatpush3.msra.mxu1 %v3732_v57 }
 0x174   :  { %2864 = vmatprep.subr.mxu0 %v4450_v44  ;;  %2907 = vmatprep.subr.mxu1 %v4450_v44 }
 0x175   :  { %2865 = vmatpush3.msra.mxu0 %v3693_v39  ;;  %2908 = vmatpush3.msra.mxu1 %v3743_v62 }
 0x176   :  { %2866 = vmatprep.subr.mxu0 %v4450_v44  ;;  %2909 = vmatprep.subr.mxu1 %v4450_v44 }
 0x177   :  { %2867 = vmatpush3.msra.mxu0 %v3710_v49  ;;  %2910 = vmatpush3.msra.mxu1 %v3759_v12 }
 0x178   :  { %2868 = vmatprep.subr.mxu0 %v4450_v44  ;;  %2911 = vmatprep.subr.mxu1 %v4450_v44 }
 0x179   :  { %2869 = vmatpush3.msra.mxu0 %v3728_v56  ;;  %2912 = vmatpush3.msra.mxu1 %v3776_v34 }
 0x17a   :  { %2870 = vmatprep.subr.mxu0 %v4450_v44  ;;  %2913 = vmatprep.subr.mxu1 %v4450_v44 }
 0x17b   :  { %2871 = vmatpush3.msra.mxu0 %v3747_v63  ;;  %2914 = vmatpush3.msra.mxu1 %v3792_v54 }
 0x17c   :  { %2872 = vmatprep.subr.mxu0 %v4450_v44  ;;  %2915 = vmatprep.subr.mxu1 %v4450_v44 }
 0x17d   :  { %2873 = vmatpush3.msra.mxu0 %v3757_v10  ;;  %2916 = vmatpush3.msra.mxu1 %v3812_v36 }
 0x17e   :  { %2874 = vmatprep.subr.mxu0 %v4450_v44  ;;  %2917 = vmatprep.subr.mxu1 %v4450_v44 }
 0x17f   :  { %2875 = vmatpush3.msra.mxu0 %v3774_v30  ;;  %2918 = vmatpush3.msra.mxu1 %v3823_v42 }
 0x180   :  { %2876 = vmatprep.subr.mxu0 %v4450_v44  ;;  %2920 = vmatmul.mubr.f32.vlgmr.msra.gmra.mxu1 %v613_v38  ;;  %v3290_v38 = vld [vmem:[#allocation7 + $0xa0] sm:$0xff]  }
 0x181   :  { %2957 = vmatprep.subr.mxu1 %v4450_v44  ;;  %2877 = vmatpush3.msra.mxu0 %v3790_v52 }
 0x182   :  { %2958 = vmatpush3.msra.mxu1 %v3616_v2  ;;  %2878 = vmatprep.subr.mxu0 %v4450_v44 }
 0x183   :  { %2959 = vmatprep.subr.mxu1 %v4450_v44  ;;  %2879 = vmatpush3.msra.mxu0 %v3808_v18 }
 0x184   :  { %2960 = vmatpush3.msra.mxu1 %v3621_v5  ;;  %2880 = vmatprep.subr.mxu0 %v4450_v44 }
 0x185   :  { %2961 = vmatprep.subr.mxu1 %v4450_v44  ;;  %2881 = vmatpush3.msra.mxu0 %v3827_v58 }
 0x186   :  { %2962 = vmatpush3.msra.mxu1 %v3629_v9  ;;  %2882 = vmatprep.subr.mxu0 %v4450_v44 }
 0x187   :  { %2963 = vmatprep.subr.mxu1 %v4450_v44  ;;  %2883 = vmatpush3.msra.mxu0 %v3837_v53 }
 0x188   :  { %2884 = vmatprep.mubr.msk.f32.mxu0 %vm3454_vm11, %v4450_v44  ;;  %2964 = vmatpush3.msra.mxu1 %v3639_v15 }
 0x189   :  { %2885 = vmatmul.mubr.f32.vlgmr.msra.gmra.mxu0 %v3903_v17  ;;  %2922 = vmatprep.subr.mxu0 %v4450_v44  ;;  %v3289_v17 = vld [vmem:[#allocation7 + $0x20] sm:$0xff]  }
 0x18a   :  { %2965 = vmatprep.subr.mxu1 %v4450_v44  ;;  %2923 = vmatpush3.msra.mxu0 %v3624_v7 }
 0x18b   :  { %2966 = vmatpush3.msra.mxu1 %v3653_v23  ;;  %2924 = vmatprep.subr.mxu0 %v4450_v44 }
 0x18c   :  { %2967 = vmatprep.subr.mxu1 %v4450_v44  ;;  %2925 = vmatpush3.msra.mxu0 %v3634_v13 }
 0x18d   :  { %2968 = vmatpush3.msra.mxu1 %v3661_v27  ;;  %2926 = vmatprep.subr.mxu0 %v4450_v44 }
 0x18e   :  { %2969 = vmatprep.subr.mxu1 %v4450_v44  ;;  %2927 = vmatpush3.msra.mxu0 %v3646_v20 }
 0x18f   :  { %2970 = vmatpush3.msra.mxu1 %v3678_v33  ;;  %2928 = vmatprep.subr.mxu0 %v4450_v44 }
 0x190   :  { %2971 = vmatprep.subr.mxu1 %v4450_v44  ;;  %2929 = vmatpush3.msra.mxu0 %v3665_v28 }
 0x191   :  { %2972 = vmatpush3.msra.mxu1 %v3695_v40  ;;  %2930 = vmatprep.subr.mxu0 %v4450_v44 }
 0x192   :  { %2973 = vmatprep.subr.mxu1 %v4450_v44  ;;  %2931 = vmatpush3.msra.mxu0 %v3684_v35 }
 0x193   :  { %2974 = vmatpush3.msra.mxu1 %v3712_v50  ;;  %2932 = vmatprep.subr.mxu0 %v4450_v44 }
 0x194   :  { %2975 = vmatprep.subr.mxu1 %v4450_v44  ;;  %2933 = vmatpush3.msra.mxu0 %v3689_v37 }
 0x195   :  { %2976 = vmatpush3.msra.mxu1 %v3732_v57  ;;  %2934 = vmatprep.subr.mxu0 %v4450_v44 }
 0x196   :  { %2977 = vmatprep.subr.mxu1 %v4450_v44  ;;  %2935 = vmatpush3.msra.mxu0 %v3706_v48 }
 0x197   :  { %2978 = vmatpush3.msra.mxu1 %v3743_v62  ;;  %2936 = vmatprep.subr.mxu0 %v4450_v44 }
 0x198   :  { %2979 = vmatprep.subr.mxu1 %v4450_v44  ;;  %2937 = vmatpush3.msra.mxu0 %v3724_v55 }
 0x199   :  { %2980 = vmatpush3.msra.mxu1 %v3759_v12  ;;  %2938 = vmatprep.subr.mxu0 %v4450_v44 }
 0x19a   :  { %2981 = vmatprep.subr.mxu1 %v4450_v44  ;;  %2939 = vmatpush3.msra.mxu0 %v3740_v61 }
 0x19b   :  { %2982 = vmatpush3.msra.mxu1 %v3776_v34  ;;  %2940 = vmatprep.subr.mxu0 %v4450_v44 }
 0x19c   :  { %2983 = vmatprep.subr.mxu1 %v4450_v44  ;;  %2941 = vmatpush3.msra.mxu0 %v4451_v3 }
 0x19d   :  { %2984 = vmatpush3.msra.mxu1 %v3792_v54  ;;  %2942 = vmatprep.subr.mxu0 %v4450_v44 }
 0x19e   :  { %2985 = vmatprep.subr.mxu1 %v4450_v44  ;;  %2943 = vmatpush3.msra.mxu0 %v4452_v45 }
 0x19f   :  { %2986 = vmatpush3.msra.mxu1 %v3812_v36  ;;  %2944 = vmatprep.subr.mxu0 %v4450_v44 }
 0x1a0   :  { %2987 = vmatprep.subr.mxu1 %v4450_v44  ;;  %2945 = vmatpush3.msra.mxu0 %v4453_v25 }
 0x1a1   :  { %2988 = vmatpush3.msra.mxu1 %v3823_v42  ;;  %2989 = vmatprep.mubr.msk.f32.mxu1 %vm3454_vm11, %v4450_v44 }
 0x1a2   :  { %2946 = vmatprep.subr.mxu0 %v4450_v44  ;;  %2990 = vmatmul.mubr.f32.vlgmr.msra.gmra.mxu1 %v3899_v16 }
 0x1a3   :  { %2947 = vmatpush3.msra.mxu0 %v4454_v31  ;;  %2954 = vmatprep.mubr.msk.f32.mxu0 %vm3454_vm11, %v4450_v44 }
 0x1a4   :  { %2948 = vmatprep.subr.mxu0 %v4450_v44  ;;  %2992 = vmatprep.subr.bf16.mxu1 %v3281_v60 }
 0x1a5   :  { %2949 = vmatpush3.msra.mxu0 %v4455_v0  ;;  %2993 = vmatpush3.bf16.msra.mxu1 %v3281_v60  ;;  %v3295_v60 = vld [vmem:[#allocation7 + $0x10] sm:$0xff]  }
 0x1a6   :  { %2950 = vmatprep.subr.mxu0 %v4450_v44  ;;  %2994 = vmatprep.subr.bf16.mxu1 %v3284_v59 }
 0x1a7   :  { %2951 = vmatpush3.msra.mxu0 %v4456_v41 }
 0x1a8   :  { %2952 = vmatprep.subr.mxu0 %v4450_v44 }
 0x1a9   :  { %2953 = vmatpush3.msra.mxu0 %v4457_v51  ;;  %2995 = vmatpush3.bf16.msra.mxu1 %v3284_v59  ;;  %v3298_v59 = vld [vmem:[#allocation7 + $0x8] sm:$0xff]  }
 0x1aa   :  { %2955 = vmatmul.mubr.f32.vlgmr.msra.gmra.mxu0 %v3899_v16  ;;  %2612 = vmatprep.subr.bf16.mxu0 %v3279_v1  ;;  %v3288_v16 = vld [vmem:[#allocation7 + $0x60] sm:$0xff]   ;;  %v3293_v1 = vld [vmem:[#allocation7 + $0x98] sm:$0xff]  }
 0x1ab   :  { %2613 = vmatpush3.bf16.msra.mxu0 %v3280_v6  ;;  %2996 = vmatprep.subr.bf16.mxu1 %v3287_v46  ;;  %v3294_v6 = vld [vmem:[#allocation7 + $0x50] sm:$0xff]  }
 0x1ac   :  { %2614 = vmatprep.subr.bf16.mxu0 %v3282_v24  ;;  %v3296_v24 = vld [vmem:[#allocation7 + $0x90] sm:$0xff]  }
 0x1ad   :  { %2997 = vmatpush3.bf16.msra.mxu1 %v3287_v46  ;;  %v3301_v46 = vld [vmem:[#allocation7] sm:$0xff]  }
 0x1ae   :  { %2998 = vmatprep.subr.bf16.mxu1 %v3290_v38 }
 0x1af   :  { %2615 = vmatpush3.bf16.msra.mxu0 %v3283_v19  ;;  %v3297_v19 = vld [vmem:[#allocation7 + $0x48] sm:$0xff]  }
 0x1b0   :  { %2616 = vmatprep.subr.bf16.mxu0 %v3285_v26  ;;  %v3299_v26 = vld [vmem:[#allocation7 + $0x88] sm:$0xff]  }
 0x1b1   :  { %2999 = vmatpush3.bf16.msra.mxu1 %v3290_v38 }
 0x1b2   :  { %3000 = vmatprep.subr.bf16.mxu1 %v3293_v1 }
 0x1b3   :  { %2617 = vmatpush3.bf16.msra.mxu0 %v3286_v43  ;;  %v3300_v43 = vld [vmem:[#allocation7 + $0x40] sm:$0xff]  }
 0x1b4   :  { %2618 = vmatprep.subr.bf16.mxu0 %v3288_v16  ;;  %v3302_v16 = vld [vmem:[#allocation7 + $0x80] sm:$0xff]  }
 0x1b5   :  { %3001 = vmatpush3.bf16.msra.mxu1 %v3293_v1 }
 0x1b6   :  { %3002 = vmatprep.subr.bf16.mxu1 %v3296_v24 }
 0x1b7   :  { %2619 = vmatpush3.bf16.msra.mxu0 %v3289_v17 }
 0x1b8   :  { %2620 = vmatprep.subr.bf16.mxu0 %v3291_v11 }
 0x1b9   :  { %3003 = vmatpush3.bf16.msra.mxu1 %v3296_v24 }
 0x1ba   :  { %3004 = vmatprep.subr.bf16.mxu1 %v3299_v26 }
 0x1bb   :  { %2621 = vmatpush3.bf16.msra.mxu0 %v3292_v21 }
 0x1bc   :  { %2622 = vmatprep.subr.bf16.mxu0 %v3294_v6 }
 0x1bd   :  { %3005 = vmatpush3.bf16.msra.mxu1 %v3299_v26 }
 0x1be   :  { %3006 = vmatprep.subr.bf16.mxu1 %v3302_v16 }
 0x1bf   :  { %2623 = vmatpush3.bf16.msra.mxu0 %v3295_v60 }
 0x1c0   :  { %2624 = vmatprep.subr.bf16.mxu0 %v3297_v19 }
 0x1c1   :  { %3007 = vmatpush3.bf16.msra.mxu1 %v3302_v16 }
 0x1c2   :  { %3047 = vmatprep.subr.mxu1 %v4450_v44 }
 0x1c3   :  { %2625 = vmatpush3.bf16.msra.mxu0 %v3298_v59 }
 0x1c4   :  { %2626 = vmatprep.subr.bf16.mxu0 %v3300_v43 }
 0x1c7   :  { %2627 = vmatpush3.bf16.msra.mxu0 %v3301_v46 }
 0x1c8   :  { %3012 = vmatprep.subr.mxu0 %v4450_v44 }
 0x220   :  { %v768_v17 = vpop.f32.mrf.mxu1 }
 0x222   :  { %v2851_v38 = vpop.f32.mrf.mxu1 }
 0x223   :  { %v4458_v38 = vld [vmem:[#allocation16_spill] sm:$0xff] }
 0x228   :  { %v617_v11 = vpop.f32.mrf.mxu0 }
 0x229   :  { %v769_v59 = vadd.f32 %v768_v17, %v617_v11  ;;  %v2424_v17 = vld [vmem:[%s4346_s4] ss:$0 sm:$0xff]  ;;  %v4397_v11 = vsub.s32 1, %v4458_v38 }
 0x22a   :  { %v2816_v21 = vpop.f32.mrf.mxu0 }
 0x22b   :  { %v4395_v21 = vsub.s32 0, %v4458_v38 }
 0x240   :  { %v961_v1 = vpop.f32.mrf.mxu1 }
 0x242   :  { %v2921_v6 = vpop.f32.mrf.mxu1 }
 0x249   :  { %v872_v60 = vpop.f32.mrf.mxu0 }
 0x24a   :  { %v873_v43 = vadd.f32 %v872_v60, %v769_v59 }
 0x24b   :  { %v2886_v24 = vpop.f32.mrf.mxu0 }
 0x24c   :  { %v962_v51 = vadd.f32 %v961_v1, %v873_v43  ;;  %v4461_v24 = vld [vmem:[#allocation52_spill] sm:$0xff] }
 0x262   :  { %v1167_v19 = vpop.f32.mrf.mxu1 }
 0x264   :  { %v2991_v26 = vpop.f32.mrf.mxu1 }
 0x26a   :  { %v1080_v46 = vpop.f32.mrf.mxu0 }
 0x26b   :  { %v1081_v41 = vadd.f32 %v1080_v46, %v962_v51 }
 0x26c   :  { %v2956_v0 = vpop.f32.mrf.mxu0 }
 0x26d   :  { %v1168_v31 = vadd.f32 %v1167_v19, %v1081_v41  ;;  %v4459_v0 = vld [vmem:[#allocation51_spill] sm:$0xff] }
 0x26f   :  { %v1171_v16 = vmul.f32 %v1168_v31, %v1168_v31  ;;  %v1181_v6 = vrot.slane %v1168_v31, %v4395_v21 }
 0x271   :  { %v1173_v25 = vrot.slane %v1171_v16, 7  ;;  %v1184_v41 = vsub.f32 %v4459_v0, %v1181_v6  ;;  %v1185_v60 = vsub.f32 %v3886_v47, %v1181_v6  ;;  %v1183_v19 = vsub.f32 %v4461_v24, %v1181_v6 }
 0x273   :  { %v1175_v45 = vsub.f32 %v1168_v31, %v1173_v25  ;;  %v2425_v31 = vld [vmem:[%s4347_s5] ss:$0 sm:$0xff] }
 0x275   :  { %v1176_v3 = vadd.f32 1e-05, %v1175_v45  ;;  %v4460_v45 = vld [vmem:[#allocation50_spill] sm:$0xff] }
 0x276   :  { %v1182_v25 = vsub.f32 %v4460_v45, %v1181_v6 }
 0x277   :  { %3311 = vrsqrt.f32 %v1176_v3 }
 0x284   :  { %v3312_v1 = vpop.eup %3311 }
 0x285   :  { %v1193_v51 = vmul.f32 %v3312_v1, %v2424_v17 }
 0x287   :  { %v1197_v3 = vrot.slane %v1193_v51, %v4397_v11 }
 0x289   :  { %v1200_v59 = vmul.f32 %v1197_v3, %v1184_v41  ;;  %v1201_v26 = vmul.f32 %v1197_v3, %v1185_v60  ;;  %v1198_v43 = vmul.f32 %v1197_v3, %v1182_v25  ;;  %v1199_v46 = vmul.f32 %v1197_v3, %v1183_v19 }
 0x28b   :  { %v1209_v16 = vadd.f32 %v2425_v31, %v1198_v43  ;;  %v1210_v17 = vadd.f32 %v2425_v31, %v1199_v46  ;;  %v1211_v1 = vadd.f32 %v2425_v31, %v1200_v59  ;;  %v1212_v0 = vadd.f32 %v2425_v31, %v1201_v26 }
 0x28d   :  { %v1213_v47 = vmax.f32 %v1209_v16, 0.0  ;;  %v1214_v21 = vmax.f32 %v1210_v17, 0.0  ;;  %v1216_v61 = vmax.f32 %v1212_v0, 0.0  ;;  %v1215_v51 = vmax.f32 %v1211_v1, 0.0  ;;  %v4466_v1 = vld [vmem:[#allocation24_spill] sm:$0xff] }
 0x28f   :  { %v1217_v11 = vrot.slane %v1213_v47, 7  ;;  %v1218_v45 = vrot.slane %v1214_v21, 7  ;;  %v1242_v55 = vpack.c.bf16 %v1214_v21, %v1213_v47  ;;  %v1220_v6 = vrot.slane %v1216_v61, 7 }
 0x290   :  { %v1229_v24 = vrot.slane %v1213_v47, 1  ;;  %v1230_v48 = vrot.slane %v1214_v21, 1  ;;  %v1231_v37 = vrot.slane %v1215_v51, 1  ;;  %v1232_v3 = vrot.slane %v1216_v61, 1  ;;  %v4467_v47 = vld [vmem:[#allocation25_spill] sm:$0xff] }
 0x291   :  { %1471 = vmatprep.mubr.bf16.mxu0 %v1242_v55  ;;  %v1223_v41 = vsel %vm167_vm0, %v1217_v11, %v1218_v45  ;;  %v1224_v60 = vsel %vm167_vm0, %v1220_v6, %v1217_v11  ;;  %v1245_v59 = vpack.c.bf16 %v1216_v61, %v1215_v51  ;;  %v1219_v43 = vrot.slane %v1215_v51, 7  ;;  %v4465_v61 = vld [vmem:[#allocation23_spill] sm:$0xff] }
 0x292   :  { %v2451_v25 = vpack.c.bf16 %v1223_v41, %v1224_v60  ;;  %v1234_v19 = vsel %vm184_vm2, %v1230_v48, %v1231_v37  ;;  %v1235_v31 = vsel %vm184_vm2, %v1229_v24, %v1230_v48  ;;  %v1233_v21 = vsel %vm184_vm2, %v1231_v37, %v1232_v3  ;;  %v4472_v41 = vld [vmem:[#allocation32_spill] sm:$0xff]  ;;  %v4473_v60 = vld [vmem:[#allocation34_spill] sm:$0xff] }
 0x293   :  { %v2457_v26 = vpack.c.bf16 %v1234_v19, %v1235_v31  ;;  %v1236_v55 = vsel %vm184_vm2, %v1232_v3, %v1229_v24  ;;  %v1221_v37 = vsel %vm167_vm0, %v1219_v43, %v1220_v6  ;;  %v1222_v48 = vsel %vm167_vm0, %v1218_v45, %v1219_v43  ;;  %v4469_v45 = vld [vmem:[#allocation27_spill] sm:$0xff]  ;;  %v4470_v6 = vld [vmem:[#allocation29_spill] sm:$0xff]  ;;  %v4471_v24 = vld [vmem:[#allocation30_spill] sm:$0xff] }
 0x294   :  { %2452 = vmatmul.mubr.msk.bf16.vlgmr.msra.gmra.mxu0 %vm3567_vm6, %v2451_v25  ;;  %v2460_v11 = vpack.c.bf16 %v1236_v55, %v1233_v21  ;;  %v2454_v0 = vpack.c.bf16 %v1221_v37, %v1222_v48  ;;  %v4474_v3 = vld [vmem:[#allocation36_spill] sm:$0xff]  ;;  %v4475_v25 = vld [vmem:[#allocation39_spill] sm:$0xff]  ;;  %v4477_v31 = vld [vmem:[#allocation42_spill] sm:$0xff] }
 0x295   :  { %3008 = vmatprep.mubr.msk.bf16.mxu1 %vm3584_vm8, %v2457_v26  ;;  %1479 = vmatprep.mubr.bf16.mxu0 %v1245_v59  ;;  %v4476_v19 = vld [vmem:[#allocation40_spill] sm:$0xff]  ;;  %v4479_v26 = vld [vmem:[#allocation46_spill] sm:$0xff]  ;;  %v4481_v55 = vld [vmem:[#allocation49_spill] sm:$0xff] }
 0x296   :  { %3009 = vmatmul.mubr.msk.bf16.vlgmr.msra.gmra.mxu1 %vm3610_vm10, %v2460_v11  ;;  %3013 = vmatpush3.msra.mxu0 %v3616_v2  ;;  %v4478_v59 = vld [vmem:[#allocation44_spill] sm:$0xff] }
 0x297   :  { %3048 = vmatpush3.msra.mxu1 %v4465_v61  ;;  %3014 = vmatprep.subr.mxu0 %v4450_v44  ;;  %v4480_v21 = vld [vmem:[#allocation48_spill] sm:$0xff] }
 0x298   :  { %3049 = vmatprep.subr.mxu1 %v4450_v44  ;;  %3015 = vmatpush3.msra.mxu0 %v3621_v5 }
 0x299   :  { %3050 = vmatpush3.msra.mxu1 %v4466_v1  ;;  %3016 = vmatprep.subr.mxu0 %v4450_v44 }
 0x29a   :  { %3051 = vmatprep.subr.mxu1 %v4450_v44  ;;  %3017 = vmatpush3.msra.mxu0 %v3629_v9 }
 0x29b   :  { %3052 = vmatpush3.msra.mxu1 %v4467_v47  ;;  %3018 = vmatprep.subr.mxu0 %v4450_v44 }
 0x29c   :  { %2455 = vmatmul.mubr.msk.bf16.gmra.mxu0 %vm3577_vm7, %v2454_v0  ;;  %3053 = vmatprep.subr.mxu1 %v4450_v44 }
 0x29d   :  { %3054 = vmatpush3.msra.mxu1 %v4469_v45  ;;  %3019 = vmatpush3.msra.mxu0 %v3639_v15 }
 0x29e   :  { %3055 = vmatprep.subr.mxu1 %v4450_v44  ;;  %3020 = vmatprep.subr.mxu0 %v4450_v44 }
 0x29f   :  { %3056 = vmatpush3.msra.mxu1 %v4470_v6  ;;  %3021 = vmatpush3.msra.mxu0 %v3653_v23 }
 0x2a0   :  { %3057 = vmatprep.subr.mxu1 %v4450_v44  ;;  %3022 = vmatprep.subr.mxu0 %v4450_v44 }
 0x2a1   :  { %3058 = vmatpush3.msra.mxu1 %v4471_v24  ;;  %3023 = vmatpush3.msra.mxu0 %v3661_v27 }
 0x2a2   :  { %3059 = vmatprep.subr.mxu1 %v4450_v44  ;;  %3024 = vmatprep.subr.mxu0 %v4450_v44 }
 0x2a3   :  { %3060 = vmatpush3.msra.mxu1 %v4472_v41  ;;  %3025 = vmatpush3.msra.mxu0 %v3678_v33 }
 0x2a4   :  { %3061 = vmatprep.subr.mxu1 %v4450_v44  ;;  %3026 = vmatprep.subr.mxu0 %v4450_v44 }
 0x2a5   :  { %3062 = vmatpush3.msra.mxu1 %v4473_v60  ;;  %3027 = vmatpush3.msra.mxu0 %v3695_v40 }
 0x2a6   :  { %3063 = vmatprep.subr.mxu1 %v4450_v44  ;;  %3028 = vmatprep.subr.mxu0 %v4450_v44 }
 0x2a7   :  { %3064 = vmatpush3.msra.mxu1 %v4474_v3  ;;  %3029 = vmatpush3.msra.mxu0 %v3712_v50 }
 0x2a8   :  { %3065 = vmatprep.subr.mxu1 %v4450_v44  ;;  %3030 = vmatprep.subr.mxu0 %v4450_v44 }
 0x2a9   :  { %3066 = vmatpush3.msra.mxu1 %v4475_v25  ;;  %3031 = vmatpush3.msra.mxu0 %v3732_v57 }
 0x2aa   :  { %3067 = vmatprep.subr.mxu1 %v4450_v44  ;;  %3032 = vmatprep.subr.mxu0 %v4450_v44 }
 0x2ab   :  { %3068 = vmatpush3.msra.mxu1 %v4476_v19  ;;  %3033 = vmatpush3.msra.mxu0 %v3743_v62 }
 0x2ac   :  { %3069 = vmatprep.subr.mxu1 %v4450_v44  ;;  %3034 = vmatprep.subr.mxu0 %v4450_v44 }
 0x2ad   :  { %3070 = vmatpush3.msra.mxu1 %v4477_v31  ;;  %3035 = vmatpush3.msra.mxu0 %v3759_v12 }
 0x2ae   :  { %3071 = vmatprep.subr.mxu1 %v4450_v44  ;;  %3036 = vmatprep.subr.mxu0 %v4450_v44 }
 0x2af   :  { %3072 = vmatpush3.msra.mxu1 %v4478_v59  ;;  %3079 = vmatprep.mubr.msk.f32.mxu1 %vm3454_vm11, %v4450_v44 }
 0x2b0   :  { %3073 = vmatprep.subr.mxu1 %v4450_v44  ;;  %3037 = vmatpush3.msra.mxu0 %v3776_v34 }
 0x2b1   :  { %3074 = vmatpush3.msra.mxu1 %v4479_v26  ;;  %3038 = vmatprep.subr.mxu0 %v4450_v44 }
 0x2b2   :  { %3075 = vmatprep.subr.mxu1 %v4450_v44  ;;  %3039 = vmatpush3.msra.mxu0 %v3792_v54 }
 0x2b3   :  { %3076 = vmatpush3.msra.mxu1 %v4480_v21  ;;  %3040 = vmatprep.subr.mxu0 %v4450_v44 }
 0x2b4   :  { %3077 = vmatprep.subr.mxu1 %v4450_v44  ;;  %3041 = vmatpush3.msra.mxu0 %v3812_v36 }
 0x2b5   :  { %3078 = vmatpush3.msra.mxu1 %v4481_v55  ;;  %3042 = vmatprep.subr.mxu0 %v4450_v44 }
 0x2b6   :  { %3117 = vmatprep.subr.mxu1 %v4450_v44  ;;  %3043 = vmatpush3.msra.mxu0 %v3823_v42 }
 0x2b7   :  { %3044 = vmatprep.mubr.msk.f32.mxu0 %vm3454_vm11, %v4450_v44  ;;  %3082 = vmatprep.subr.mxu0 %v4450_v44 }
 0x354   :  { %v2628_v43 = vpop.f32.mrf.mxu0 }
 0x356   :  { %v3010_v46 = vpop.f32.mrf.mxu1  ;;  %v2629_v11 = vpop.f32.mrf.mxu0 }
 0x357   :  { %v2630_v61 = vadd.f32 %v2629_v11, %v2628_v43 }
 0x358   :  { %v1522_v16 = vpop.f32.mrf.mxu1  ;;  %v2631_v17 = vpop.f32.mrf.mxu0 }
 0x359   :  { %v4156_v6 = vadd.f32 %v2630_v61, %v1522_v16 }
 0x35a   :  { %v3011_v37 = vpop.f32.mrf.mxu1  ;;  %v2632_v48 = vpop.f32.mrf.mxu0 }
 0x35b   :  { %v2633_v1 = vadd.f32 %v2632_v48, %v2631_v17  ;;  %v1546_v19 = vmul.f32 %v4156_v6, %v4156_v6 }
 0x35c   :  { %v1525_v0 = vpop.f32.mrf.mxu1  ;;  %v2634_v47 = vpop.f32.mrf.mxu0 }
 0x35d   :  { %v4154_v51 = vadd.f32 %v2633_v1, %v1525_v0 }
 0x35e   :  { %v2635_v45 = vpop.f32.mrf.mxu0 }
 0x35f   :  { %v2636_v24 = vadd.f32 %v2635_v45, %v2634_v47  ;;  %v1547_v60 = vmul.f32 %v4154_v51, %v4154_v51  ;;  %v1537_v31 = vadd.f32 %v4154_v51, %v4156_v6 }
 0x360   :  { %v2637_v41 = vpop.f32.mrf.mxu0 }
 0x361   :  { %v4160_v3 = vadd.f32 %v3010_v46, %v2636_v24  ;;  %v1550_v21 = vadd.f32 %v1547_v60, %v1546_v19 }
 0x362   :  { %v2638_v25 = vpop.f32.mrf.mxu0 }
 0x363   :  { %v1548_v59 = vmul.f32 %v4160_v3, %v4160_v3  ;;  %v2639_v26 = vadd.f32 %v2638_v25, %v2637_v41  ;;  %v1538_v55 = vadd.f32 %v1537_v31, %v4160_v3 }
 0x365   :  { %v4169_v43 = vadd.f32 %v3011_v37, %v2639_v26  ;;  %v1551_v11 = vadd.f32 %v1550_v21, %v1548_v59 }
 0x367   :  { %v1539_v46 = vadd.f32 %v1538_v55, %v4169_v43  ;;  %v1549_v16 = vmul.f32 %v4169_v43, %v4169_v43 }
 0x369   :  { %v1540_v17 = vrot.slane %v1539_v46, 4  ;;  %v1552_v48 = vadd.f32 %v1551_v11, %v1549_v16 }
 0x36b   :  { %v1541_v61 = vadd.f32 %v1540_v17, %v1539_v46  ;;  %v1553_v1 = vrot.slane %v1552_v48, 4 }
 0x36d   :  { %v1542_v0 = vrot.slane %v1541_v61, 2  ;;  %v1554_v47 = vadd.f32 %v1553_v1, %v1552_v48  ;;  %v2462_v1 = vld [vmem:[%s4348_s6] ss:$0 sm:$0xff]  ;;  %s3455_s6 = smov [#allocation11]  }
 0x36f   :  { %v1543_v45 = vadd.f32 %v1542_v0, %v1541_v61  ;;  %v1555_v24 = vrot.slane %v1554_v47, 2  ;;  %v4495_v0 = vsub.s32 0, %v4458_v38 }
 0x371   :  { %v1544_v41 = vrot.slane %v1543_v45, 1  ;;  %v1556_v60 = vadd.f32 %v1555_v24, %v1554_v47 }
 0x373   :  { %v1557_v25 = vrot.slane %v1556_v60, 1  ;;  %v1545_v19 = vadd.f32 %v1544_v41, %v1543_v45 }
 0x375   :  { %v1558_v37 = vadd.f32 %v1557_v25, %v1556_v60  ;;  %v4496_v60 = vsub.s32 1, %v4458_v38 }
 0x377   :  { %v1559_v31 = vsel %vm511_vm12, %v1545_v19, %v1558_v37 }
 0x378   :  { %v1560_v59 = vmul.f32 0.001953125, %v1559_v31  ;;  %v2463_v31 = vld [vmem:[%s4349_s7] ss:$0 sm:$0xff]  ;;  %s2374_s7 = sshll.u32 %s3455_s6, 4  ;;  %s2375_s7 = int_to_ptr.vmem [resolvable:$true] %s2374_s7 }
 0x379   :  { %s3415_s18 = scalar_lea.vmem %s2375_s7, 512  ;;  %p3420_p12 = scmp.lt.s32.totalorder %s2375_s7, %s2375_s7 }
 0x37a   :  { %v4175_v26 = vand.u32 4294901760, %v1560_v59  ;;  %p3416_p11 = scmp.ne.s32.totalorder %s2375_s7, %s3415_s18  ;;  %p3421_p13 = scmp.lt.s32.totalorder %s3415_s18, %s3415_s18 }
 0x37c   :  { %v4178_v21 = vsub.f32 %v1560_v59, %v4175_v26  ;;  %3080 = vmatmul.mubr.f32.vlgmr.msra.gmra.mxu1 %v4175_v26  ;;  %p3422_p0 = por %p3421_p13, %p3420_p12 }
 0x37d   :  { %3118 = vmatpush3.msra.mxu1 %v3616_v2  ;;  %3149 = vmatprep.mubr.msk.f32.mxu1 %vm3454_vm11, %v4450_v44 }
 0x37e   :  { %3119 = vmatprep.subr.mxu1 %v4450_v44  ;;  %v1644_v55 = vand.u32 4294901760, %v4178_v21  ;;  %p3423_p1 = pnand %p3422_p0, %p3416_p11 }
 0x37f   :  { %3120 = vmatpush3.msra.mxu1 %v3621_v5 }
 0x380   :  { %3121 = vmatprep.subr.mxu1 %v4450_v44  ;;  %v1645_v11 = vsub.f32 %v4178_v21, %v1644_v55 }
 0x381   :  { %3122 = vmatpush3.msra.mxu1 %v3629_v9 }
 0x382   :  { %3123 = vmatprep.subr.mxu1 %v4450_v44  ;;  %v1646_v46 = vand.u32 4294901760, %v1645_v11 }
 0x383   :  { %3124 = vmatpush3.msra.mxu1 %v3639_v15 }
 0x384   :  { %3125 = vmatprep.subr.mxu1 %v4450_v44  ;;  %3045 = vmatmul.mubr.f32.vlgmr.msra.gmra.mxu0 %v1646_v46 }
 0x385   :  { %3083 = vmatpush3.msra.mxu0 %v3619_v4  ;;  %3126 = vmatpush3.msra.mxu1 %v3653_v23  ;;  %v4483_v4 = vld [vmem:[#allocation28_spill] sm:$0xff] }
 0x386   :  { %3084 = vmatprep.subr.mxu0 %v4450_v44  ;;  %3127 = vmatprep.subr.mxu1 %v4450_v44 }
 0x387   :  { %3085 = vmatpush3.msra.mxu0 %v3627_v8  ;;  %3128 = vmatpush3.msra.mxu1 %v3661_v27  ;;  %v4486_v8 = vld [vmem:[#allocation35_spill] sm:$0xff] }
 0x388   :  { %3086 = vmatprep.subr.mxu0 %v4450_v44  ;;  %3129 = vmatprep.subr.mxu1 %v4450_v44 }
 0x389   :  { %3087 = vmatpush3.msra.mxu0 %v3637_v14  ;;  %3130 = vmatpush3.msra.mxu1 %v3678_v33  ;;  %v4489_v14 = vld [vmem:[#allocation41_spill] sm:$0xff] }
 0x38a   :  { %3088 = vmatprep.subr.mxu0 %v4450_v44  ;;  %3131 = vmatprep.subr.mxu1 %v4450_v44 }
 0x38b   :  { %3089 = vmatpush3.msra.mxu0 %v3650_v22  ;;  %3132 = vmatpush3.msra.mxu1 %v3695_v40  ;;  %v4491_v22 = vld [vmem:[#allocation45_spill] sm:$0xff] }
 0x38c   :  { %3090 = vmatprep.subr.mxu0 %v4450_v44  ;;  %3133 = vmatprep.subr.mxu1 %v4450_v44 }
 0x38d   :  { %3091 = vmatpush3.msra.mxu0 %v3668_v29  ;;  %3134 = vmatpush3.msra.mxu1 %v3712_v50  ;;  %v3305_v29 = vld [vmem:[#allocation8 + $0x28] sm:$0xff]  }
 0x38e   :  { %3092 = vmatprep.subr.mxu0 %v4450_v44  ;;  %3135 = vmatprep.subr.mxu1 %v4450_v44 }
 0x38f   :  { %3093 = vmatpush3.msra.mxu0 %v3676_v32  ;;  %3136 = vmatpush3.msra.mxu1 %v3732_v57  ;;  %v3306_v32 = vld [vmem:[#allocation8 + $0x20] sm:$0xff]  }
 0x390   :  { %3094 = vmatprep.subr.mxu0 %v4450_v44  ;;  %3137 = vmatprep.subr.mxu1 %v4450_v44 }
 0x391   :  { %3095 = vmatpush3.msra.mxu0 %v3693_v39  ;;  %3138 = vmatpush3.msra.mxu1 %v3743_v62  ;;  %v3309_v39 = vld [vmem:[#allocation8 + $0x8] sm:$0xff]  }
 0x392   :  { %3096 = vmatprep.subr.mxu0 %v4450_v44  ;;  %3139 = vmatprep.subr.mxu1 %v4450_v44 }
 0x393   :  { %3097 = vmatpush3.msra.mxu0 %v3710_v49  ;;  %3140 = vmatpush3.msra.mxu1 %v3759_v12  ;;  %v4494_v49 = vld [vmem:[#allocation19_spill] sm:$0xff] }
 0x394   :  { %3098 = vmatprep.subr.mxu0 %v4450_v44  ;;  %3141 = vmatprep.subr.mxu1 %v4450_v44 }
 0x395   :  { %3099 = vmatpush3.msra.mxu0 %v3728_v56  ;;  %3142 = vmatpush3.msra.mxu1 %v3776_v34 }
 0x396   :  { %3100 = vmatprep.subr.mxu0 %v4450_v44  ;;  %3143 = vmatprep.subr.mxu1 %v4450_v44 }
 0x397   :  { %3101 = vmatpush3.msra.mxu0 %v3747_v63  ;;  %3144 = vmatpush3.msra.mxu1 %v3792_v54 }
 0x398   :  { %3102 = vmatprep.subr.mxu0 %v4450_v44  ;;  %3145 = vmatprep.subr.mxu1 %v4450_v44 }
 0x399   :  { %3103 = vmatpush3.msra.mxu0 %v3757_v10  ;;  %3146 = vmatpush3.msra.mxu1 %v3812_v36 }
 0x39a   :  { %3104 = vmatprep.subr.mxu0 %v4450_v44  ;;  %3147 = vmatprep.subr.mxu1 %v4450_v44 }
 0x39b   :  { %3105 = vmatpush3.msra.mxu0 %v3774_v30  ;;  %3148 = vmatpush3.msra.mxu1 %v3823_v42 }
 0x39c   :  { %3106 = vmatprep.subr.mxu0 %v4450_v44  ;;  %3150 = vmatmul.mubr.f32.vlgmr.msra.gmra.mxu1 %v1644_v55 }
 0x39d   :  { %3187 = vmatprep.subr.mxu1 %v4450_v44  ;;  %3107 = vmatpush3.msra.mxu0 %v3790_v52 }
 0x39e   :  { %3188 = vmatpush3.msra.mxu1 %v3616_v2  ;;  %3108 = vmatprep.subr.mxu0 %v4450_v44  ;;  %v4482_v2 = vld [vmem:[#allocation26_spill] sm:$0xff] }
 0x39f   :  { %3189 = vmatprep.subr.mxu1 %v4450_v44  ;;  %3109 = vmatpush3.msra.mxu0 %v3808_v18 }
 0x3a0   :  { %3190 = vmatpush3.msra.mxu1 %v3621_v5  ;;  %3110 = vmatprep.subr.mxu0 %v4450_v44  ;;  %v4484_v5 = vld [vmem:[#allocation31_spill] sm:$0xff] }
 0x3a1   :  { %3191 = vmatprep.subr.mxu1 %v4450_v44  ;;  %3111 = vmatpush3.msra.mxu0 %v3827_v58 }
 0x3a2   :  { %3192 = vmatpush3.msra.mxu1 %v3629_v9  ;;  %3112 = vmatprep.subr.mxu0 %v4450_v44  ;;  %v4487_v9 = vld [vmem:[#allocation37_spill] sm:$0xff] }
 0x3a3   :  { %3193 = vmatprep.subr.mxu1 %v4450_v44  ;;  %3113 = vmatpush3.msra.mxu0 %v3837_v53 }
 0x3a4   :  { %3114 = vmatprep.mubr.msk.f32.mxu0 %vm3454_vm11, %v4450_v44  ;;  %3194 = vmatpush3.msra.mxu1 %v3639_v15  ;;  %v4490_v15 = vld [vmem:[#allocation43_spill] sm:$0xff] }
 0x3a5   :  { %3115 = vmatmul.mubr.f32.vlgmr.msra.gmra.mxu0 %v4178_v21  ;;  %3152 = vmatprep.subr.mxu0 %v4450_v44 }
 0x3a6   :  { %3195 = vmatprep.subr.mxu1 %v4450_v44  ;;  %3153 = vmatpush3.msra.mxu0 %v3624_v7  ;;  %v4485_v7 = vld [vmem:[#allocation33_spill] sm:$0xff] }
 0x3a7   :  { %3196 = vmatpush3.msra.mxu1 %v3653_v23  ;;  %3154 = vmatprep.subr.mxu0 %v4450_v44  ;;  %v3304_v23 = vld [vmem:[#allocation8 + $0x30] sm:$0xff]  }
 0x3a8   :  { %3197 = vmatprep.subr.mxu1 %v4450_v44  ;;  %3155 = vmatpush3.msra.mxu0 %v3634_v13  ;;  %v4488_v13 = vld [vmem:[#allocation38_spill] sm:$0xff] }
 0x3a9   :  { %3198 = vmatpush3.msra.mxu1 %v3661_v27  ;;  %3156 = vmatprep.subr.mxu0 %v4450_v44  ;;  %v4492_v27 = vld [vmem:[#allocation47_spill] sm:$0xff] }
 0x3aa   :  { %3199 = vmatprep.subr.mxu1 %v4450_v44  ;;  %3157 = vmatpush3.msra.mxu0 %v3646_v20  ;;  %v3303_v20 = vld [vmem:[#allocation8 + $0x38] sm:$0xff]  }
 0x3ab   :  { %3200 = vmatpush3.msra.mxu1 %v3678_v33  ;;  %3158 = vmatprep.subr.mxu0 %v4450_v44  ;;  %v3307_v33 = vld [vmem:[#allocation8 + $0x18] sm:$0xff]  }
 0x3ac   :  { %3201 = vmatprep.subr.mxu1 %v4450_v44  ;;  %3159 = vmatpush3.msra.mxu0 %v3665_v28  ;;  %v4493_v28 = vld [vmem:[#allocation17_spill] sm:$0xff] }
 0x3ad   :  { %3202 = vmatpush3.msra.mxu1 %v3695_v40  ;;  %3160 = vmatprep.subr.mxu0 %v4450_v44  ;;  %v3310_v40 = vld [vmem:[#allocation8] sm:$0xff]  }
 0x3ae   :  { %3203 = vmatprep.subr.mxu1 %v4450_v44  ;;  %3161 = vmatpush3.msra.mxu0 %v3684_v35  ;;  %v3308_v35 = vld [vmem:[#allocation8 + $0x10] sm:$0xff]  }
 0x3af   :  { %3204 = vmatpush3.msra.mxu1 %v3712_v50  ;;  %3162 = vmatprep.subr.mxu0 %v4450_v44 }
 0x3b0   :  { %3205 = vmatprep.subr.mxu1 %v4450_v44  ;;  %3163 = vmatpush3.msra.mxu0 %v4482_v2 }
 0x3b1   :  { %3206 = vmatpush3.msra.mxu1 %v3732_v57  ;;  %3164 = vmatprep.subr.mxu0 %v4450_v44 }
 0x3b2   :  { %3207 = vmatprep.subr.mxu1 %v4450_v44  ;;  %3165 = vmatpush3.msra.mxu0 %v4483_v4 }
 0x3b3   :  { %3208 = vmatpush3.msra.mxu1 %v3743_v62  ;;  %3166 = vmatprep.subr.mxu0 %v4450_v44 }
 0x3b4   :  { %3209 = vmatprep.subr.mxu1 %v4450_v44  ;;  %3167 = vmatpush3.msra.mxu0 %v4484_v5 }
 0x3b5   :  { %3210 = vmatpush3.msra.mxu1 %v3759_v12  ;;  %3168 = vmatprep.subr.mxu0 %v4450_v44 }
 0x3b6   :  { %3211 = vmatprep.subr.mxu1 %v4450_v44  ;;  %3169 = vmatpush3.msra.mxu0 %v4485_v7 }
 0x3b7   :  { %3212 = vmatpush3.msra.mxu1 %v3776_v34  ;;  %3170 = vmatprep.subr.mxu0 %v4450_v44 }
 0x3b8   :  { %3213 = vmatprep.subr.mxu1 %v4450_v44  ;;  %3171 = vmatpush3.msra.mxu0 %v4486_v8 }
 0x3b9   :  { %3214 = vmatpush3.msra.mxu1 %v3792_v54  ;;  %3172 = vmatprep.subr.mxu0 %v4450_v44 }
 0x3ba   :  { %3215 = vmatprep.subr.mxu1 %v4450_v44  ;;  %3173 = vmatpush3.msra.mxu0 %v4487_v9 }
 0x3bb   :  { %3216 = vmatpush3.msra.mxu1 %v3812_v36  ;;  %3174 = vmatprep.subr.mxu0 %v4450_v44 }
 0x3bc   :  { %3217 = vmatprep.subr.mxu1 %v4450_v44  ;;  %3175 = vmatpush3.msra.mxu0 %v4488_v13 }
 0x3bd   :  { %3218 = vmatpush3.msra.mxu1 %v3823_v42  ;;  %3219 = vmatprep.mubr.msk.f32.mxu1 %vm3454_vm11, %v4450_v44 }
 0x3be   :  { %3176 = vmatprep.subr.mxu0 %v4450_v44  ;;  %3220 = vmatmul.mubr.f32.vlgmr.msra.gmra.mxu1 %v4175_v26 }
 0x3bf   :  { %3177 = vmatpush3.msra.mxu0 %v4489_v14  ;;  %3184 = vmatprep.mubr.msk.f32.mxu0 %vm3454_vm11, %v4450_v44 }
 0x3c0   :  { %3178 = vmatprep.subr.mxu0 %v4450_v44 }
 0x3c1   :  { %3179 = vmatpush3.msra.mxu0 %v4490_v15 }
 0x3c2   :  { %3180 = vmatprep.subr.mxu0 %v4450_v44 }
 0x3c3   :  { %3181 = vmatpush3.msra.mxu0 %v4491_v22 }
 0x3c4   :  { %3182 = vmatprep.subr.mxu0 %v4450_v44 }
 0x3c5   :  { %3183 = vmatpush3.msra.mxu0 %v4492_v27 }
 0x3c6   :  { %3185 = vmatmul.mubr.f32.vlgmr.msra.gmra.mxu0 %v4175_v26  ;;  %3222 = vmatprep.subr.bf16.mxu0 %v3303_v20 }
 0x3c7   :  { %3223 = vmatpush3.bf16.msra.mxu0 %v3303_v20  ;;  %3238 = vmatprep.mubr.bf16.mxu0 %v4493_v28 }
 0x3c8   :  { %3224 = vmatprep.subr.bf16.mxu0 %v3304_v23 }
 0x3cb   :  { %3225 = vmatpush3.bf16.msra.mxu0 %v3304_v23 }
 0x3cc   :  { %3226 = vmatprep.subr.bf16.mxu0 %v3305_v29 }
 0x3cf   :  { %3227 = vmatpush3.bf16.msra.mxu0 %v3305_v29 }
 0x3d0   :  { %3228 = vmatprep.subr.bf16.mxu0 %v3306_v32 }
 0x3d3   :  { %3229 = vmatpush3.bf16.msra.mxu0 %v3306_v32 }
 0x3d4   :  { %3230 = vmatprep.subr.bf16.mxu0 %v3307_v33 }
 0x3d7   :  { %3231 = vmatpush3.bf16.msra.mxu0 %v3307_v33 }
 0x3d8   :  { %3232 = vmatprep.subr.bf16.mxu0 %v3308_v35 }
 0x3db   :  { %3233 = vmatpush3.bf16.msra.mxu0 %v3308_v35 }
 0x3dc   :  { %3234 = vmatprep.subr.bf16.mxu0 %v3309_v39 }
 0x3df   :  { %3235 = vmatpush3.bf16.msra.mxu0 %v3309_v39 }
 0x3e0   :  { %3236 = vmatprep.subr.bf16.mxu0 %v3310_v40 }
 0x3e3   :  { %3237 = vmatpush3.bf16.msra.mxu0 %v3310_v40 }
 0x3e6   :  { %3239 = vmatmul.mubr.bf16.vlgmr.msra.gmra.mxu0 %v4494_v49 }
 0x43c   :  { %v1799_v50 = vpop.f32.mrf.mxu1 }
 0x43e   :  { %v3081_v53 = vpop.f32.mrf.mxu1 }
 0x444   :  { %v1648_v56 = vpop.f32.mrf.mxu0 }
 0x445   :  { %v1800_v34 = vadd.f32 %v1799_v50, %v1648_v56 }
 0x446   :  { %v3046_v57 = vpop.f32.mrf.mxu0 }
 0x45c   :  { %v1992_v62 = vpop.f32.mrf.mxu1 }
 0x45e   :  { %v3151_v63 = vpop.f32.mrf.mxu1 }
 0x465   :  { %v1903_v10 = vpop.f32.mrf.mxu0 }
 0x466   :  { %v1904_v54 = vadd.f32 %v1903_v10, %v1800_v34 }
 0x467   :  { %v3116_v12 = vpop.f32.mrf.mxu0 }
 0x468   :  { %v1993_v58 = vadd.f32 %v1992_v62, %v1904_v54 }
 0x47e   :  { %v2198_v30 = vpop.f32.mrf.mxu1 }
 0x480   :  { %v3221_v52 = vpop.f32.mrf.mxu1 }
 0x486   :  { %v2111_v18 = vpop.f32.mrf.mxu0 }
 0x487   :  { %v2112_v36 = vadd.f32 %v2111_v18, %v1993_v58 }
 0x488   :  { %v3186_v42 = vpop.f32.mrf.mxu0 }
 0x489   :  { %v2199_v44 = vadd.f32 %v2198_v30, %v2112_v36 }
 0x48b   :  { %v2202_v16 = vmul.f32 %v2199_v44, %v2199_v44  ;;  %v2212_v47 = vrot.slane %v2199_v44, %v4495_v0 }
 0x48d   :  { %v2204_v17 = vrot.slane %v2202_v16, 7  ;;  %v2215_v41 = vsub.f32 %v4160_v3, %v2212_v47  ;;  %v2213_v19 = vsub.f32 %v4156_v6, %v2212_v47  ;;  %v2216_v37 = vsub.f32 %v4169_v43, %v2212_v47 }
 0x48e   :  { %v2214_v55 = vsub.f32 %v4154_v51, %v2212_v47 }
 0x48f   :  { %v2206_v48 = vsub.f32 %v2199_v44, %v2204_v17 }
 0x491   :  { %v2207_v61 = vadd.f32 1e-05, %v2206_v48 }
 0x493   :  { %3313 = vrsqrt.f32 %v2207_v61 }
 0x4a0   :  { %v3314_v45 = vpop.eup %3313 }
 0x4a1   :  { %v2224_v24 = vmul.f32 %v3314_v45, %v2462_v1 }
 0x4a3   :  { %v2228_v25 = vrot.slane %v2224_v24, %v4496_v60 }
 0x4a5   :  { %v2231_v59 = vmul.f32 %v2228_v25, %v2215_v41  ;;  %v2229_v26 = vmul.f32 %v2228_v25, %v2213_v19  ;;  %v2232_v21 = vmul.f32 %v2228_v25, %v2216_v37  ;;  %v2230_v3 = vmul.f32 %v2228_v25, %v2214_v55 }
 0x4a6   :  { %v3240_v11 = vpop.f32.mrf.mxu0 }
 0x4a7   :  { %v2242_v46 = vadd.f32 %v2463_v31, %v2231_v59  ;;  %v2240_v2 = vadd.f32 %v2463_v31, %v2229_v26  ;;  %v2243_v7 = vadd.f32 %v2463_v31, %v2232_v21  ;;  %v2241_v13 = vadd.f32 %v2463_v31, %v2230_v3 }
 0x4a8   :  { %v2342_v4 = vpop.f32.mrf.mxu0 }
 0x4a9   :  { %v2359_v38 = vadd.f32 %v3240_v11, %v2242_v46  ;;  %v2357_v5 = vadd.f32 %v2342_v4, %v2240_v2 }
 0x4aa   :  { %v3241_v6 = vpop.f32.mrf.mxu0 }
 0x4ab   :  { %v2363_v8 = vmax.f32 %v2359_v38, 0.0  ;;  %v2361_v43 = vmax.f32 %v2357_v5, 0.0  ;;  %v2360_v9 = vadd.f32 %v3241_v6, %v2243_v7 }
 0x4ac   :  { %v2345_v14 = vpop.f32.mrf.mxu0 }
 0x4ad   :  { %2367 = vst [vmem:[#allocation11 + $0x10] sm:$0xff] %v2363_v8  ;;  %2365 = vst [vmem:[#allocation11] sm:$0xff] %v2361_v43  ;;  %v2364_v15 = vmax.f32 %v2360_v9, 0.0  ;;  %v2358_v51 = vadd.f32 %v2345_v14, %v2241_v13 }
 0x4af   :  { %2368 = vst [vmem:[#allocation11 + $0x18] sm:$0xff] %v2364_v15  ;;  %v2362_v20 = vmax.f32 %v2358_v51, 0.0 }
 0x4b1   :  { %2366 = vst [vmem:[#allocation11 + $0x8] sm:$0xff] %v2362_v20 }
 0x4b2   :  { %3426 = shalt.err (!%p3423_p1)
}
 0x4b3   :  { %2380 = dma.vmem_to_hbm [thread:$0]  %s2375_s7, 512, %s4351_s9, [#allocation4], %s3448_s23, %s3448_s23, %s3449_s24  }
 0x4b4   :  { %3441 = dma.done.wait [#allocation4], 512  }
 0x4b5   :  { %3442 = vsyncadd [#allocation4], 4294966784 }
 0x4b6   :  { %2384 = vsyncpa [#allocation3], 1 }
 0x4b7   :  { %2385 = vsyncpa [#allocation6], 1 }
 0x4b8   :  { %2386 = vsyncpa [#allocation9], 1 }
 0x4b9   :  { %2387 = vsyncpa [#allocation4], 1 }

</bundles_post_ra>
